<compile_context>
chip_gen: v5e
topology: v5e:2x2
jax: 0.10.0
libtpu: 0.0.40
codegen_flags: <defaults>
</compile_context>

<pallas_src>
import jax
import jax.numpy as jnp
from jax.experimental import pallas as pl
from jax.experimental.pallas import tpu as pltpu

_BN_EPS = 1e-5      # PyTorch BatchNorm1d default eps
_NORM_EPS = 1e-8    # SGRAF l1norm / l2norm eps


def _contrastive_rec2_kernel(scalars_ref, a_is_ref, a_em_ref, m_ref, trm_ref,
                             attn_w_ref, wt_ref, cost_ref):
    eps = jnp.float32(_NORM_EPS)
    attn_b = scalars_ref[0]          # BN-folded bias of the attention Linear(D -> 1)
    margin = scalars_ref[1]

    wa = attn_w_ref[...].reshape(1, 1, -1)        # (1, 1, D) f32, BN-folded attention weight

    def saf(a_ref):
        a = a_ref[...].astype(jnp.float32)                             # (TB, L, D)
        # gate-based attention: sigmoid(BN(Linear_{D->1}(a)))  (BN pre-folded into wa/attn_b)
        logit = jnp.sum(a * wa, axis=-1, keepdims=True) + attn_b       # (TB, L, 1)
        gate = 1.0 / (1.0 + jnp.exp(-logit))                           # sigmoid (EUP exp)
        # l1-normalize the gates over the L axis (gate > 0, abs kept for faithfulness; free)
        attn = gate / (jnp.sum(jnp.abs(gate), axis=1, keepdims=True) + eps)
        # attention-weighted aggregation over L, then l2-normalize over D
        sim = jnp.sum(attn * a, axis=1)                                # (TB, D)
        return sim / (jnp.sqrt(jnp.sum(sim * sim, axis=-1, keepdims=True)) + eps)

    # difference of the two SAF embeddings: the shared Linear bias cancels out of the loss,
    # so one MXU matmul suffices for both branches.
    dsim = saf(a_is_ref) - saf(a_em_ref)                               # (TB, D)
    dy = jnp.dot(dsim, wt_ref[...], preferred_element_type=jnp.float32)  # (TB, D)

    mm = m_ref[...].astype(jnp.float32)                                # (TB, D)
    tm = trm_ref[...].astype(jnp.float32)
    mw = 0.4 * mm + 0.6 * tm                                           # fused diag weights

    delta = jnp.sum(mw * dy, axis=-1, keepdims=True)                   # (TB, 1)
    cost_ref[...] = jnp.maximum(margin + delta, 0.0)


def contrastive_loss_rec2(A_is_t, A_em_t, m, tr_m, params, *, margin=0.0, block_b=None):
    """Forward pass of ContrastiveLoss_rec2 as one fused Pallas TPU kernel.

    params keys:
      attn_w (D,), attn_b (), bn_gamma (), bn_beta (), bn_mean (), bn_var ()   -> self.saf
      w_weight (D, D) [PyTorch (out, in)], w_bias (D,)                         -> self.w
    Returns the (1,)-shaped loss, matching `cost_s.sum(0)` in the PyTorch module.
    """
    B, L, D = A_is_t.shape
    assert A_em_t.shape == (B, L, D) and m.shape == (B, D) and tr_m.shape == (B, D)

    # ---- fold eval-mode BatchNorm1d(1) into the attention linear (wrapper-side, tiny) ----
    # TODO(synk): training-mode BatchNorm (batch statistics across all rows) is not implemented.
    scale = params["bn_gamma"] * jax.lax.rsqrt(params["bn_var"] + _BN_EPS)
    wa_eff = (params["attn_w"].reshape(-1) * scale).reshape(1, D).astype(jnp.float32)
    ba_eff = scale * (params["attn_b"] - params["bn_mean"]) + params["bn_beta"]

    # Linear bias cancels in (y_is - y_em), so only W^T is shipped to the kernel.
    wt = params["w_weight"].T.astype(jnp.float32)              # (in, out) so kernel does x @ Wt

    scalars = jnp.concatenate([
        jnp.reshape(ba_eff, (1,)).astype(jnp.float32),
        jnp.full((1,), margin, dtype=jnp.float32),
    ])

    # ---- batch tile: biggest multiple of 8 whose double-buffered stream fits ~20 MiB ----
    itemsize = jnp.dtype(A_is_t.dtype).itemsize
    per_row_bytes = (2 * L * D + 2 * D) * itemsize              # A_is + A_em + m + tr_m per row
    if block_b is None:
        tb = max(1, (20 * 1024 * 1024) // (2 * per_row_bytes))
        block_b = B if tb >= B else max(8, (tb // 8) * 8)
    block_b = min(block_b, B)                                   # never exceed the batch
    grid_b = pl.cdiv(B, block_b)

    stream_bytes = 2 * block_b * per_row_bytes                  # double-buffered streamed inputs
    resident_bytes = (D * D + D + 2) * 4                        # W^T, attention weight, scalars
    vmem_limit = int(min(64 * 1024 * 1024,
                         max(32 * 1024 * 1024,
                             stream_bytes + resident_bytes + 8 * 1024 * 1024)))

    cost = pl.pallas_call(
        _contrastive_rec2_kernel,
        out_shape=jax.ShapeDtypeStruct((B, 1), jnp.float32),
        grid_spec=pl.GridSpec(
            grid=(grid_b,),
            in_specs=[
                pl.BlockSpec(memory_space=pltpu.MemorySpace.SMEM),    # [ba_eff, margin]
                pl.BlockSpec((block_b, L, D), lambda i: (i, 0, 0)),   # A_is tile
                pl.BlockSpec((block_b, L, D), lambda i: (i, 0, 0)),   # A_em tile
                pl.BlockSpec((block_b, D), lambda i: (i, 0)),         # m tile
                pl.BlockSpec((block_b, D), lambda i: (i, 0)),         # tr_m tile
                pl.BlockSpec((1, D), lambda i: (0, 0)),               # attn weight (resident)
                pl.BlockSpec((D, D), lambda i: (0, 0)),               # W^T (resident)
            ],
            out_specs=pl.BlockSpec((block_b, 1), lambda i: (i, 0)),
        ),
        compiler_params=pltpu.CompilerParams(
            dimension_semantics=("parallel",),    # batch tiles independent -> both TCs on v7x
            vmem_limit_bytes=vmem_limit,
        ),
    )(scalars, A_is_t, A_em_t, m, tr_m, wa_eff, wt)

    # tiny final reduction (B floats) in plain JAX; matches torch `cost_s.sum(0)` -> shape (1,)
    return jnp.sum(cost, axis=0)


def _reference(A_is_t, A_em_t, m, tr_m, params, margin=0.0):
    """Pure-JAX mirror of the PyTorch forward (builds the full (B, B) score matrices)."""
    hi = jax.lax.Precision.HIGHEST

    def l1norm(x, axis):
        return x / (jnp.sum(jnp.abs(x), axis=axis, keepdims=True) + _NORM_EPS)

    def l2norm(x, axis):
        return x / (jnp.sqrt(jnp.sum(x * x, axis=axis, keepdims=True)) + _NORM_EPS)

    def saf(a):  # SGRAF AttentionFiltration, BatchNorm1d(1) in eval mode
        logit = jnp.einsum("bld,d->bl", a, params["attn_w"], precision=hi) + params["attn_b"]
        scale = params["bn_gamma"] / jnp.sqrt(params["bn_var"] + _BN_EPS)
        logit = scale * (logit - params["bn_mean"]) + params["bn_beta"]
        attn = l1norm(jax.nn.sigmoid(logit), axis=-1)                        # (B, L)
        sim = jnp.einsum("bl,bld->bd", attn, a, precision=hi)                # (B, D)
        return l2norm(sim, axis=-1)

    def w(x):
        return jnp.dot(x, params["w_weight"].T, precision=hi) + params["w_bias"]

    y_is, y_em = w(saf(A_is_t)), w(saf(A_em_t))
    scores_is = jnp.dot(m, y_is.T, precision=hi)
    scores_em = jnp.dot(m, y_em.T, precision=hi)
    scores_is_trm = jnp.dot(tr_m, y_is.T, precision=hi)
    scores_em_trm = jnp.dot(tr_m, y_em.T, precision=hi)
    d_is = jnp.diagonal(scores_is)[:, None]
    d_em = jnp.diagonal(scores_em)[:, None]
    d_is_trm = jnp.diagonal(scores_is_trm)[:, None]
    d_em_trm = jnp.diagonal(scores_em_trm)[:, None]
    d_is_all = 0.4 * d_is + 0.6 * d_is_trm
    d_em_all = 0.6 * d_em_trm + 0.4 * d_em
    cost_s = jnp.maximum(margin + d_is_all - d_em_all, 0.0)
    return jnp.sum(cost_s, axis=0)


if __name__ == "__main__":
    key = jax.random.PRNGKey(0)
    B, L, D = 8, 8, 128          # batch, alignments per pair, embed_dim
    ks = jax.random.split(key, 7)
    A_is_t = jax.random.normal(ks[0], (B, L, D), dtype=jnp.float32)
    A_em_t = jax.random.normal(ks[1], (B, L, D), dtype=jnp.float32)
    m = jax.random.normal(ks[2], (B, D), dtype=jnp.float32)
    tr_m = jax.random.normal(ks[3], (B, D), dtype=jnp.float32)

    params = {
        "attn_w": jax.random.normal(ks[4], (D,), dtype=jnp.float32) / jnp.sqrt(D),
        "attn_b": jnp.float32(0.1),
        "bn_gamma": jnp.float32(1.3),
        "bn_beta": jnp.float32(-0.2),
        "bn_mean": jnp.float32(0.05),
        "bn_var": jnp.float32(0.9),
        "w_weight": jax.random.normal(ks[5], (D, D), dtype=jnp.float32) / jnp.sqrt(D),
        "w_bias": jax.random.normal(ks[6], (D,), dtype=jnp.float32) * 0.01,
    }

    loss = contrastive_loss_rec2(A_is_t, A_em_t, m, tr_m, params, margin=0.0)
    jax.block_until_ready(loss)

    ref = _reference(A_is_t, A_em_t, m, tr_m, params, margin=0.0)
    assert loss.shape == (1,)
    assert jnp.allclose(loss, ref, atol=1e-3, rtol=1e-3), (loss, ref)
    print("KERNEL_OK")
</pallas_src>

<mosaic_0001>
module attributes {stable_mosaic.version = 11 : i64} {
  func.func @_contrastive_rec2_kernel(%arg0: i32, %arg1: memref<2xf32, #tpu.memory_space<smem>>, %arg2: memref<8x8x128xf32, #tpu.memory_space<vmem>>, %arg3: memref<8x8x128xf32, #tpu.memory_space<vmem>>, %arg4: memref<8x128xf32, #tpu.memory_space<vmem>>, %arg5: memref<8x128xf32, #tpu.memory_space<vmem>>, %arg6: memref<1x128xf32, #tpu.memory_space<vmem>>, %arg7: memref<128x128xf32, #tpu.memory_space<vmem>>, %arg8: memref<8x1xf32, #tpu.memory_space<vmem>>) attributes {dimension_semantics = [#tpu.dimension_semantics<parallel>], iteration_bounds = array<i64: 1>, scalar_prefetch = 0 : i64, scratch_operands = 0 : i64, tpu.core_type = #tpu.core_type<tc>, window_params = [{transform_indices = @transform_0, window_bounds = array<i64: 2>}, {transform_indices = @transform_1, window_bounds = array<i64: 8, 8, 128>}, {transform_indices = @transform_2, window_bounds = array<i64: 8, 8, 128>}, {transform_indices = @transform_3, window_bounds = array<i64: 8, 128>}, {transform_indices = @transform_4, window_bounds = array<i64: 8, 128>}, {pipeline_mode = #tpu.pipeline_mode<synchronous>, transform_indices = @transform_5, window_bounds = array<i64: 1, 128>}, {pipeline_mode = #tpu.pipeline_mode<synchronous>, transform_indices = @transform_6, window_bounds = array<i64: 128, 128>}, {transform_indices = @transform_7, window_bounds = array<i64: 8, 1>}]} {
    %c0 = arith.constant 0 : index
    %0 = memref.load %arg1[%c0] : memref<2xf32, #tpu.memory_space<smem>>
    %c1 = arith.constant 1 : index
    %1 = memref.load %arg1[%c1] : memref<2xf32, #tpu.memory_space<smem>>
    %c0_0 = arith.constant 0 : index
    %c0_1 = arith.constant 0 : index
    %2 = vector.load %arg6[%c0_0, %c0_1] : memref<1x128xf32, #tpu.memory_space<vmem>>, vector<1x128xf32>
    %3 = vector.shape_cast %2 : vector<1x128xf32> to vector<1x1x128xf32>
    %c0_2 = arith.constant 0 : index
    %c0_3 = arith.constant 0 : index
    %c0_4 = arith.constant 0 : index
    %4 = vector.load %arg2[%c0_2, %c0_3, %c0_4] : memref<8x8x128xf32, #tpu.memory_space<vmem>>, vector<8x8x128xf32>
    %5 = vector.broadcast %3 : vector<1x1x128xf32> to vector<8x8x128xf32>
    %6 = arith.mulf %4, %5 : vector<8x8x128xf32>
    %cst = arith.constant dense<0.000000e+00> : vector<8x8xf32>
    %7 = vector.multi_reduction <add>, %6, %cst [2] : vector<8x8x128xf32> to vector<8x8xf32>
    %8 = vector.shape_cast %7 : vector<8x8xf32> to vector<8x8x1xf32>
    %9 = vector.broadcast %0 : f32 to vector<8x8x1xf32>
    %10 = arith.addf %8, %9 : vector<8x8x1xf32>
    %cst_5 = arith.constant 0.000000e+00 : f32
    %11 = vector.broadcast %cst_5 : f32 to vector<8x8x1xf32>
    %12 = arith.subf %11, %10 : vector<8x8x1xf32>
    %13 = math.exp %12 : vector<8x8x1xf32>
    %cst_6 = arith.constant 1.000000e+00 : f32
    %14 = vector.broadcast %cst_6 : f32 to vector<8x8x1xf32>
    %15 = arith.addf %14, %13 : vector<8x8x1xf32>
    %cst_7 = arith.constant 1.000000e+00 : f32
    %16 = vector.broadcast %cst_7 : f32 to vector<8x8x1xf32>
    %17 = arith.divf %16, %15 : vector<8x8x1xf32>
    %18 = math.absf %17 : vector<8x8x1xf32>
    %cst_8 = arith.constant dense<0.000000e+00> : vector<8x1xf32>
    %19 = vector.multi_reduction <add>, %18, %cst_8 [1] : vector<8x8x1xf32> to vector<8x1xf32>
    %20 = vector.shape_cast %19 : vector<8x1xf32> to vector<8x1x1xf32>
    %cst_9 = arith.constant 9.99999993E-9 : f32
    %21 = vector.broadcast %cst_9 : f32 to vector<8x1x1xf32>
    %22 = arith.addf %20, %21 : vector<8x1x1xf32>
    %23 = vector.broadcast %22 : vector<8x1x1xf32> to vector<8x8x1xf32>
    %24 = arith.divf %17, %23 : vector<8x8x1xf32>
    %25 = vector.broadcast %24 : vector<8x8x1xf32> to vector<8x8x128xf32>
    %26 = arith.mulf %25, %4 : vector<8x8x128xf32>
    %cst_10 = arith.constant dense<0.000000e+00> : vector<8x128xf32>
    %27 = vector.multi_reduction <add>, %26, %cst_10 [1] : vector<8x8x128xf32> to vector<8x128xf32>
    %28 = arith.mulf %27, %27 : vector<8x128xf32>
    %cst_11 = arith.constant dense<0.000000e+00> : vector<8xf32>
    %29 = vector.multi_reduction <add>, %28, %cst_11 [1] : vector<8x128xf32> to vector<8xf32>
    %30 = vector.shape_cast %29 : vector<8xf32> to vector<8x1xf32>
    %31 = math.sqrt %30 : vector<8x1xf32>
    %cst_12 = arith.constant 9.99999993E-9 : f32
    %32 = vector.broadcast %cst_12 : f32 to vector<8x1xf32>
    %33 = arith.addf %31, %32 : vector<8x1xf32>
    %34 = vector.broadcast %33 : vector<8x1xf32> to vector<8x128xf32>
    %35 = arith.divf %27, %34 : vector<8x128xf32>
    %c0_13 = arith.constant 0 : index
    %c0_14 = arith.constant 0 : index
    %c0_15 = arith.constant 0 : index
    %36 = vector.load %arg3[%c0_13, %c0_14, %c0_15] : memref<8x8x128xf32, #tpu.memory_space<vmem>>, vector<8x8x128xf32>
    %37 = vector.broadcast %3 : vector<1x1x128xf32> to vector<8x8x128xf32>
    %38 = arith.mulf %36, %37 : vector<8x8x128xf32>
    %cst_16 = arith.constant dense<0.000000e+00> : vector<8x8xf32>
    %39 = vector.multi_reduction <add>, %38, %cst_16 [2] : vector<8x8x128xf32> to vector<8x8xf32>
    %40 = vector.shape_cast %39 : vector<8x8xf32> to vector<8x8x1xf32>
    %41 = vector.broadcast %0 : f32 to vector<8x8x1xf32>
    %42 = arith.addf %40, %41 : vector<8x8x1xf32>
    %cst_17 = arith.constant 0.000000e+00 : f32
    %43 = vector.broadcast %cst_17 : f32 to vector<8x8x1xf32>
    %44 = arith.subf %43, %42 : vector<8x8x1xf32>
    %45 = math.exp %44 : vector<8x8x1xf32>
    %cst_18 = arith.constant 1.000000e+00 : f32
    %46 = vector.broadcast %cst_18 : f32 to vector<8x8x1xf32>
    %47 = arith.addf %46, %45 : vector<8x8x1xf32>
    %cst_19 = arith.constant 1.000000e+00 : f32
    %48 = vector.broadcast %cst_19 : f32 to vector<8x8x1xf32>
    %49 = arith.divf %48, %47 : vector<8x8x1xf32>
    %50 = math.absf %49 : vector<8x8x1xf32>
    %cst_20 = arith.constant dense<0.000000e+00> : vector<8x1xf32>
    %51 = vector.multi_reduction <add>, %50, %cst_20 [1] : vector<8x8x1xf32> to vector<8x1xf32>
    %52 = vector.shape_cast %51 : vector<8x1xf32> to vector<8x1x1xf32>
    %cst_21 = arith.constant 9.99999993E-9 : f32
    %53 = vector.broadcast %cst_21 : f32 to vector<8x1x1xf32>
    %54 = arith.addf %52, %53 : vector<8x1x1xf32>
    %55 = vector.broadcast %54 : vector<8x1x1xf32> to vector<8x8x1xf32>
    %56 = arith.divf %49, %55 : vector<8x8x1xf32>
    %57 = vector.broadcast %56 : vector<8x8x1xf32> to vector<8x8x128xf32>
    %58 = arith.mulf %57, %36 : vector<8x8x128xf32>
    %cst_22 = arith.constant dense<0.000000e+00> : vector<8x128xf32>
    %59 = vector.multi_reduction <add>, %58, %cst_22 [1] : vector<8x8x128xf32> to vector<8x128xf32>
    %60 = arith.mulf %59, %59 : vector<8x128xf32>
    %cst_23 = arith.constant dense<0.000000e+00> : vector<8xf32>
    %61 = vector.multi_reduction <add>, %60, %cst_23 [1] : vector<8x128xf32> to vector<8xf32>
    %62 = vector.shape_cast %61 : vector<8xf32> to vector<8x1xf32>
    %63 = math.sqrt %62 : vector<8x1xf32>
    %cst_24 = arith.constant 9.99999993E-9 : f32
    %64 = vector.broadcast %cst_24 : f32 to vector<8x1xf32>
    %65 = arith.addf %63, %64 : vector<8x1xf32>
    %66 = vector.broadcast %65 : vector<8x1xf32> to vector<8x128xf32>
    %67 = arith.divf %59, %66 : vector<8x128xf32>
    %68 = arith.subf %35, %67 : vector<8x128xf32>
    %c0_25 = arith.constant 0 : index
    %c0_26 = arith.constant 0 : index
    %69 = vector.load %arg7[%c0_25, %c0_26] : memref<128x128xf32, #tpu.memory_space<vmem>>, vector<128x128xf32>
    %cst_27 = arith.constant dense<0.000000e+00> : vector<8x128xf32>
    %70 = tpu.matmul %68, %69, %cst_27 {dimension_numbers = #tpu.dot_dimension_numbers<[1], [0], [0], [1], [0, 0, 1, 1], [], []>} : vector<8x128xf32>, vector<128x128xf32>, vector<8x128xf32> -> vector<8x128xf32>
    %c0_28 = arith.constant 0 : index
    %c0_29 = arith.constant 0 : index
    %71 = vector.load %arg4[%c0_28, %c0_29] : memref<8x128xf32, #tpu.memory_space<vmem>>, vector<8x128xf32>
    %c0_30 = arith.constant 0 : index
    %c0_31 = arith.constant 0 : index
    %72 = vector.load %arg5[%c0_30, %c0_31] : memref<8x128xf32, #tpu.memory_space<vmem>>, vector<8x128xf32>
    %cst_32 = arith.constant 4.000000e-01 : f32
    %73 = vector.broadcast %cst_32 : f32 to vector<8x128xf32>
    %74 = arith.mulf %73, %71 : vector<8x128xf32>
    %cst_33 = arith.constant 6.000000e-01 : f32
    %75 = vector.broadcast %cst_33 : f32 to vector<8x128xf32>
    %76 = arith.mulf %75, %72 : vector<8x128xf32>
    %77 = arith.addf %74, %76 : vector<8x128xf32>
    %78 = arith.mulf %77, %70 : vector<8x128xf32>
    %cst_34 = arith.constant dense<0.000000e+00> : vector<8xf32>
    %79 = vector.multi_reduction <add>, %78, %cst_34 [1] : vector<8x128xf32> to vector<8xf32>
    %80 = vector.shape_cast %79 : vector<8xf32> to vector<8x1xf32>
    %81 = vector.broadcast %1 : f32 to vector<8x1xf32>
    %82 = arith.addf %81, %80 : vector<8x1xf32>
    %cst_35 = arith.constant 0.000000e+00 : f32
    %83 = vector.broadcast %cst_35 : f32 to vector<8x1xf32>
    %84 = arith.maximumf %82, %83 : vector<8x1xf32>
    %c0_36 = arith.constant 0 : index
    %c0_37 = arith.constant 0 : index
    %85 = vector.load %arg8[%c0_36, %c0_37] : memref<8x1xf32, #tpu.memory_space<vmem>>, vector<8x1xf32>
    tpu.vector_store %arg8[%c0_36, %c0_37], %84 {strides = array<i32>} : memref<8x1xf32, #tpu.memory_space<vmem>>, vector<8x1xf32>,
    return
  }
  func.func @transform_0(%arg0: i32) -> i32 {
    %c0_i32 = arith.constant 0 : i32
    %c0_i32_0 = arith.constant 0 : i32
    return %c0_i32 : i32
  }
  func.func @transform_1(%arg0: i32) -> (i32, i32, i32) {
    %c0_i32 = arith.constant 0 : i32
    %c0_i32_0 = arith.constant 0 : i32
    %c0_i32_1 = arith.constant 0 : i32
    return %arg0, %c0_i32, %c0_i32_0 : i32, i32, i32
  }
  func.func @transform_2(%arg0: i32) -> (i32, i32, i32) {
    %c0_i32 = arith.constant 0 : i32
    %c0_i32_0 = arith.constant 0 : i32
    %c0_i32_1 = arith.constant 0 : i32
    return %arg0, %c0_i32, %c0_i32_0 : i32, i32, i32
  }
  func.func @transform_3(%arg0: i32) -> (i32, i32) {
    %c0_i32 = arith.constant 0 : i32
    %c0_i32_0 = arith.constant 0 : i32
    return %arg0, %c0_i32 : i32, i32
  }
  func.func @transform_4(%arg0: i32) -> (i32, i32) {
    %c0_i32 = arith.constant 0 : i32
    %c0_i32_0 = arith.constant 0 : i32
    return %arg0, %c0_i32 : i32, i32
  }
  func.func @transform_5(%arg0: i32) -> (i32, i32) {
    %c0_i32 = arith.constant 0 : i32
    %c0_i32_0 = arith.constant 0 : i32
    %c0_i32_1 = arith.constant 0 : i32
    return %c0_i32, %c0_i32_0 : i32, i32
  }
  func.func @transform_6(%arg0: i32) -> (i32, i32) {
    %c0_i32 = arith.constant 0 : i32
    %c0_i32_0 = arith.constant 0 : i32
    %c0_i32_1 = arith.constant 0 : i32
    return %c0_i32, %c0_i32_0 : i32, i32
  }
  func.func @transform_7(%arg0: i32) -> (i32, i32) {
    %c0_i32 = arith.constant 0 : i32
    %c0_i32_0 = arith.constant 0 : i32
    return %arg0, %c0_i32 : i32, i32
  }
}

</mosaic_0001>

<bundles_post_ra>
// kernel: tpu_custom_call.1
= control target key start
LH: loop header
LB: loop body
LE: loop exit
PB: predicated region body
PF: predicated region fallthrough
CT: control target
= control target key end

     0   :  { %12 = vsyncpa [#allocation4], 0  ;;  %s3055_s0 = inlined_call_operand.hbm [shape: f32[2], index: 0, kind: input, shape index: {}]   ;;  %s3056_s1 = inlined_call_operand.hbm [shape: f32[8,8,128], index: 1, kind: input, shape index: {}]   ;;  %s3057_s2 = inlined_call_operand.hbm [shape: f32[8,8,128], index: 2, kind: input, shape index: {}]   ;;  %s3058_s3 = inlined_call_operand.hbm [shape: f32[8,128], index: 3, kind: input, shape index: {}]   ;;  %s3059_s4 = inlined_call_operand.hbm [shape: f32[8,128], index: 4, kind: input, shape index: {}]   ;;  %s3060_s5 = inlined_call_operand.vmem [shape: f32[1,128], index: 5, kind: input, shape index: {}]   ;;  %s3061_s6 = inlined_call_operand.hbm [shape: f32[128,128], index: 6, kind: input, shape index: {}]   ;;  %s3062_s7 = inlined_call_operand.vmem [shape: f32[8,1], index: 7, kind: output, shape index: {}]  }
   0x1   :  { %13 = vsyncpa [#allocation3], 0 }
   0x2   :  { %14 = vsyncpa [#allocation7], 0 }
   0x3   :  { %15 = vsyncpa [#allocation10], 0  ;;  %s42_s26 = sshll.u32 %s3057_s2, 4  ;;  %s1722_s27 = smov [#allocation6]   ;;  %s43_s26 = int_to_ptr.hbm [resolvable:$true] %s42_s26 }
   0x4   :  { %s44_s28 = sshll.u32 %s1722_s27, 4  ;;  %s67_s8 = sshll.u32 %s3059_s4, 4  ;;  %s45_s28 = int_to_ptr.vmem [resolvable:$true] %s44_s28  ;;  %s68_s8 = int_to_ptr.hbm [resolvable:$true] %s67_s8 }
   0x5   :  { %s1723_s9 = smov 128   ;;  %s1724_s10 = smov 8  }
   0x6   :  { %50 = dma.hbm_to_vmem [thread:$0]  %s43_s26, 1024, %s45_s28, [#allocation7], %s1723_s9, %s1723_s9, %s1724_s10  }
   0x7   :  { %s1725_s11 = smov [#allocation9]   ;;  %s21_s2 = sshll.u32 %s3055_s0, 4  ;;  %s22_s2 = int_to_ptr.hbm [resolvable:$true] %s21_s2 }
   0x8   :  { %s69_s12 = sshll.u32 %s1725_s11, 4  ;;  %s29_s4 = sshll.u32 %s3056_s1, 4  ;;  %s70_s12 = int_to_ptr.vmem [resolvable:$true] %s69_s12  ;;  %s30_s4 = int_to_ptr.hbm [resolvable:$true] %s29_s4 }
   0x9   :  { %72 = dma.hbm_to_vmem [thread:$0]  %s68_s8, 128, %s70_s12, [#allocation10]  }
   0xa   :  { %s1726_s17 = smov [#allocation2]   ;;  %s1727_s18 = smov [#allocation5]  }
   0xb   :  { %24 = dma.hbm_to_smem %s22_s2, 16, %s1726_s17, [#allocation4]  }
   0xc   :  { %s31_s19 = sshll.u32 %s1727_s18, 4  ;;  %s56_s22 = sshll.u32 %s3058_s3, 4  ;;  %s32_s19 = int_to_ptr.vmem [resolvable:$true] %s31_s19  ;;  %s57_s22 = int_to_ptr.hbm [resolvable:$true] %s56_s22 }
   0xd   :  { %37 = dma.hbm_to_vmem [thread:$0]  %s30_s4, 1024, %s32_s19, [#allocation3], %s1723_s9, %s1723_s9, %s1724_s10  }
   0xe   :  { %s79_s24 = sshll.u32 %s3061_s6, 4  ;;  %s1728_s1 = smov [#allocation8]   ;;  %s80_s24 = int_to_ptr.hbm [resolvable:$true] %s79_s24 }
   0xf   :  { %s58_s25 = sshll.u32 %s1728_s1, 4  ;;  %s1729_s26 = smov [#allocation11]   ;;  %s59_s25 = int_to_ptr.vmem [resolvable:$true] %s58_s25 }
  0x10   :  { %61 = dma.hbm_to_vmem [thread:$0]  %s57_s22, 128, %s59_s25, [#allocation7]  }
  0x11   :  { %s81_s27 = sshll.u32 %s1729_s26, 4  ;;  %s82_s27 = int_to_ptr.vmem [resolvable:$true] %s81_s27 }
  0x12   :  { %87 = dma.hbm_to_vmem [thread:$0]  %s80_s24, 2048, %s82_s27, [#allocation10], %s1723_s9, %s1723_s9, %s1724_s10  }
  0x13   :  { %1714 = dma.done.wait [#allocation4], 16  }
  0x14   :  { %1715 = vsyncadd [#allocation4], 4294967280 }
  0x15   :  { %1716 = dma.done.wait [#allocation3], 1024  }
  0x16   :  { %1717 = vsyncadd [#allocation3], 4294966272 }
  0x17   :  { %1718 = dma.done.wait [#allocation7], 1152  }
  0x18   :  { %1719 = vsyncadd [#allocation7], 4294966144 }
  0x19   :  { %1720 = dma.done.wait [#allocation10], 2176  }
  0x1a   :  { %1721 = vsyncadd [#allocation10], 4294965120 }
  0x1b   :  { %112 = sfence }
  0x1c   :  { %v1438_v0 = vld [vmem:[%s3060_s5] ss:$0 sm:$0xff]  ;;  %v1802_v2 = vld [vmem:[#allocation5 + $0x10] sm:$0xff]  ;;  %v1809_v7 = vld [vmem:[#allocation6 + $0x8] sm:$0xff]  ;;  %s113_s5 = sld [smem:[#allocation2]] }
  0x1d   :  { %v1800_v1 = vld [vmem:[#allocation6] sm:$0xff]  ;;  %v129_v5 = vmul.f32 %v1438_v0, %v1802_v2  ;;  %v736_v8 = vld [vmem:[#allocation6 + $0x10] sm:$0xff]  ;;  %v1811_v9 = vld [vmem:[#allocation5 + $0x8] sm:$0xff]  ;;  %v743_v10 = vmul.f32 %v1438_v0, %v1809_v7  ;;  %s1429_s28 = sld [smem:[#allocation2 + $0x1]] }
  0x1e   :  { %v1804_v3 = vld [vmem:[#allocation5] sm:$0xff]  ;;  %v742_v4 = vmul.f32 %v1438_v0, %v1800_v1  ;;  %v744_v11 = vmul.f32 %v1438_v0, %v736_v8  ;;  %v128_v12 = vmul.f32 %v1438_v0, %v1811_v9  ;;  %v737_v13 = vld [vmem:[#allocation6 + $0x18] sm:$0xff]  ;;  %v121_v19 = vld [vmem:[#allocation5 + $0x28] sm:$0xff] }
  0x1f   :  { %v127_v6 = vmul.f32 %v1438_v0, %v1804_v3  ;;  %139 = vadd.xlane.f32.xlu2 %v129_v5  ;;  %v120_v14 = vld [vmem:[#allocation5 + $0x20] sm:$0xff]  ;;  %v119_v15 = vld [vmem:[#allocation5 + $0x18] sm:$0xff]  ;;  %v745_v16 = vmul.f32 %v1438_v0, %v737_v13  ;;  %v739_v20 = vld [vmem:[#allocation6 + $0x28] sm:$0xff]  ;;  %v132_v22 = vmul.f32 %v1438_v0, %v121_v19 }
  0x20   :  { %750 = vadd.xlane.f32.xlu1 %v742_v4  ;;  %v131_v17 = vmul.f32 %v1438_v0, %v120_v14  ;;  %v130_v18 = vmul.f32 %v1438_v0, %v119_v15  ;;  %v738_v21 = vld [vmem:[#allocation6 + $0x20] sm:$0xff]  ;;  %v747_v23 = vmul.f32 %v1438_v0, %v739_v20  ;;  %v740_v25 = vld [vmem:[#allocation6 + $0x30] sm:$0xff]  ;;  %v123_v26 = vld [vmem:[#allocation5 + $0x38] sm:$0xff] }
  0x21   :  { %135 = vadd.xlane.f32.xlu0 %v127_v6  ;;  %v746_v24 = vmul.f32 %v1438_v0, %v738_v21  ;;  %v122_v27 = vld [vmem:[#allocation5 + $0x30] sm:$0xff]  ;;  %v748_v28 = vmul.f32 %v1438_v0, %v740_v25  ;;  %v134_v29 = vmul.f32 %v1438_v0, %v123_v26  ;;  %v741_v31 = vld [vmem:[#allocation6 + $0x38] sm:$0xff] }
  0x22   :  { %v133_v30 = vmul.f32 %v1438_v0, %v122_v27  ;;  %v749_v32 = vmul.f32 %v1438_v0, %v741_v31  ;;  %v1815_v33 = vstv %s113_s5 }
  0x27   :  { %754 = vadd.xlane.f32.xlu2 %v744_v11 }
  0x28   :  { %752 = vadd.xlane.f32.xlu1 %v743_v10 }
  0x29   :  { %137 = vadd.xlane.f32.xlu0 %v128_v12 }
  0x2f   :  { %143 = vadd.xlane.f32.xlu2 %v131_v17 }
  0x30   :  { %756 = vadd.xlane.f32.xlu1 %v745_v16 }
  0x31   :  { %141 = vadd.xlane.f32.xlu0 %v130_v18 }
  0x37   :  { %760 = vadd.xlane.f32.xlu2 %v747_v23 }
  0x38   :  { %145 = vadd.xlane.f32.xlu1 %v132_v22 }
  0x39   :  { %758 = vadd.xlane.f32.xlu0 %v746_v24 }
  0x3f   :  { %149 = vadd.xlane.f32.xlu2 %v134_v29 }
  0x40   :  { %762 = vadd.xlane.f32.xlu1 %v748_v28 }
  0x41   :  { %147 = vadd.xlane.f32.xlu0 %v133_v30 }
  0x49   :  { %764 = vadd.xlane.f32.xlu0 %v749_v32 }
  0x92   :  { %v140_v35 = vpop.xlane.xlu2 %139 }
  0x93   :  { %v751_v34 = vpop.xlane.xlu1 %750  ;;  %v154_v37 = vadd.f32 %v1815_v33, %v140_v35 }
  0x94   :  { %v766_v36 = vadd.f32 %v751_v34, %v1815_v33  ;;  %v136_v38 = vpop.xlane.xlu0 %135 }
  0x95   :  { %v152_v39 = vadd.f32 %v1815_v33, %v136_v38  ;;  %v162_v41 = vsub.f32 0.0, %v154_v37 }
  0x96   :  { %v774_v40 = vsub.f32 0.0, %v766_v36 }
  0x97   :  { %v160_v42 = vsub.f32 0.0, %v152_v39  ;;  %v172_v44 = vmul.f32 1.442695, %v162_v41 }
  0x98   :  { %v782_v43 = vmul.f32 1.442695, %v774_v40 }
  0x99   :  { %v168_v45 = vmul.f32 1.442695, %v160_v42 }
  0x9a   :  { %1439 = vpow2.f32 %v782_v43  ;;  %v755_v47 = vpop.xlane.xlu2 %754 }
  0x9b   :  { %1441 = vpow2.f32 %v172_v44  ;;  %v753_v46 = vpop.xlane.xlu1 %752  ;;  %v768_v49 = vadd.f32 %v755_v47, %v1815_v33 }
  0x9c   :  { %1443 = vpow2.f32 %v168_v45  ;;  %v767_v48 = vadd.f32 %v753_v46, %v1815_v33  ;;  %v138_v50 = vpop.xlane.xlu0 %137 }
  0x9d   :  { %v153_v51 = vadd.f32 %v1815_v33, %v138_v50  ;;  %v776_v53 = vsub.f32 0.0, %v768_v49 }
  0x9e   :  { %v775_v52 = vsub.f32 0.0, %v767_v48 }
  0x9f   :  { %v161_v54 = vsub.f32 0.0, %v153_v51  ;;  %v786_v59 = vmul.f32 1.442695, %v776_v53 }
  0xa0   :  { %v1440_v55 = vpop.eup %1439  ;;  %v784_v56 = vmul.f32 1.442695, %v775_v52 }
  0xa1   :  { %v1442_v57 = vpop.eup %1441  ;;  %v798_v58 = vadd.f32 1.0, %v1440_v55  ;;  %v170_v62 = vmul.f32 1.442695, %v161_v54 }
  0xa2   :  { %v1444_v60 = vpop.eup %1443  ;;  %v1823_v61 = vadd.f32 1.0, %v1442_v57  ;;  %1445 = vpow2.f32 %v784_v56  ;;  %v144_v20 = vpop.xlane.xlu2 %143 }
  0xa3   :  { %1447 = vrcp.f32 %v798_v58  ;;  %v757_v63 = vpop.xlane.xlu1 %756  ;;  %v1826_v0 = vadd.f32 1.0, %v1444_v60  ;;  %v815_v4 = vand.u32 2147483647, %v798_v58  ;;  %v817_v5 = vand.u32 2147483648, %v798_v58 }
  0xa4   :  { %1449 = vrcp.f32 %v1823_v61  ;;  %v769_v6 = vadd.f32 %v757_v63, %v1815_v33  ;;  %v231_v8 = vand.u32 2147483647, %v1823_v61  ;;  %v233_v10 = vand.u32 2147483648, %v1823_v61 }
  0xa5   :  { %1451 = vpow2.f32 %v786_v59  ;;  %vm811_vm0 = vweird.f32 %v798_v58  ;;  %vm227_vm1 = vweird.f32 %v1823_v61  ;;  %vm1835_vm2 = vcmp.eq.f32.partialorder %v815_v4, 8.507059e+37 }
  0xa6   :  { %1453 = vpow2.f32 %v170_v62  ;;  %v777_v12 = vsub.f32 0.0, %v769_v6  ;;  %v818_v18 = vor.u32 1.1754944e-38, %v817_v5  ;;  %vm1840_vm3 = vcmp.eq.f32.partialorder %v231_v8, 8.507059e+37 }
  0xa7   :  { %1455 = vrcp.f32 %v1826_v0  ;;  %v234_v24 = vor.u32 1.1754944e-38, %v233_v10  ;;  %vm197_vm4 = vweird.f32 %v1826_v0  ;;  %v201_v27 = vand.u32 2147483647, %v1826_v0 }
  0xa8   :  { %v1446_v11 = vpop.eup %1445  ;;  %v788_v19 = vmul.f32 1.442695, %v777_v12  ;;  %v203_v28 = vand.u32 2147483648, %v1826_v0  ;;  %v1853_v34 = vadd.f32 %v1815_v33, %v144_v20 }
  0xa9   :  { %v1448_v13 = vpop.eup %1447  ;;  %v1833_v14 = vadd.f32 1.0, %v1446_v11  ;;  %vm1859_vm7 = vcmp.eq.f32.partialorder %v201_v27, 8.507059e+37 }
  0xaa   :  { %v1450_v15 = vpop.eup %1449  ;;  %v807_v16 = vmul.f32 %v1448_v13, %v798_v58  ;;  %vm812_vm5 = vweird.f32 %v1448_v13  ;;  %v204_v43 = vor.u32 1.1754944e-38, %v203_v28 }
  0xab   :  { %v1452_v21 = vpop.eup %1451  ;;  %v223_v22 = vmul.f32 %v1450_v15, %v1823_v61  ;;  %1457 = vrcp.f32 %v1833_v14  ;;  %v830_v37 = vand.u32 2147483647, %v1833_v14  ;;  %vm228_vm6 = vweird.f32 %v1450_v15  ;;  %vm813_vm8 = vmor %vm811_vm0, %vm812_vm5 }
  0xac   :  { %v1454_v25 = vpop.eup %1453  ;;  %v808_v26 = vsub.f32 1.0, %v807_v16  ;;  %v1848_v29 = vadd.f32 1.0, %v1452_v21  ;;  %1459 = vpow2.f32 %v788_v19  ;;  %v832_v39 = vand.u32 2147483648, %v1833_v14  ;;  %vm229_vm11 = vmor %vm227_vm1, %vm228_vm6 }
  0xad   :  { %v1456_v30 = vpop.eup %1455  ;;  %v224_v31 = vsub.f32 1.0, %v223_v22  ;;  %v1850_v32 = vadd.f32 1.0, %v1454_v25  ;;  %vm826_vm10 = vweird.f32 %v1833_v14  ;;  %vm1870_vm12 = vcmp.eq.f32.partialorder %v830_v37, 8.507059e+37 }
  0xae   :  { %v809_v35 = vmul.f32 %v1448_v13, %v808_v26  ;;  %v193_v36 = vmul.f32 %v1456_v30, %v1826_v0  ;;  %1461 = vrcp.f32 %v1848_v29  ;;  %vm198_vm9 = vweird.f32 %v1456_v30 }
  0xaf   :  { %v225_v38 = vmul.f32 %v1450_v15, %v224_v31  ;;  %1463 = vrcp.f32 %v1850_v32  ;;  %v833_v52 = vor.u32 1.1754944e-38, %v832_v39  ;;  %v845_v53 = vand.u32 2147483647, %v1848_v29  ;;  %vm199_vm13 = vmor %vm197_vm4, %vm198_vm9 }
  0xb0   :  { %v810_v40 = vadd.f32 %v1448_v13, %v809_v35  ;;  %v194_v41 = vsub.f32 1.0, %v193_v36  ;;  %vm841_vm15 = vweird.f32 %v1848_v29  ;;  %v847_v61 = vand.u32 2147483648, %v1848_v29 }
  0xb1   :  { %v1458_v44 = vpop.eup %1457  ;;  %v226_v45 = vadd.f32 %v1450_v15, %v225_v38  ;;  %vm1895_vm0 = vcmp.eq.f32.partialorder %v845_v53, 8.507059e+37  ;;  %vm212_vm1 = vweird.f32 %v1850_v32  ;;  %v218_v36 = vand.u32 2147483648, %v1850_v32 }
  0xb2   :  { %v814_v46 = vsel %vm813_vm8, %v1448_v13, %v810_v40  ;;  %v195_v47 = vmul.f32 %v1456_v30, %v194_v41  ;;  %v822_v48 = vmul.f32 %v1458_v44, %v1833_v14  ;;  %v1460_v54 = vpop.eup %1459  ;;  %vm827_vm14 = vweird.f32 %v1458_v44 }
  0xb3   :  { %v1876_v50 = vsel %vm1835_vm2, %v818_v18, %v814_v46  ;;  %v230_v51 = vsel %vm229_vm11, %v1450_v15, %v226_v45  ;;  %v1900_v0 = vadd.f32 1.0, %v1460_v54  ;;  %vm828_vm2 = vmor %vm826_vm10, %vm827_vm14  ;;  %v848_v18 = vor.u32 1.1754944e-38, %v847_v61 }
  0xb4   :  { %v926_v55 = vand.u32 2147483647, %v1876_v50  ;;  %v1882_v56 = vsel %vm1840_vm3, %v234_v24, %v230_v51  ;;  %v196_v57 = vadd.f32 %v1456_v30, %v195_v47  ;;  %v823_v58 = vsub.f32 1.0, %v822_v48  ;;  %v1462_v59 = vpop.eup %1461 }
  0xb5   :  { %v314_v60 = vand.u32 2147483647, %v1882_v56  ;;  %v837_v5 = vmul.f32 %v1462_v59, %v1848_v29  ;;  %v1464_v6 = vpop.eup %1463  ;;  %vm842_vm3 = vweird.f32 %v1462_v59  ;;  %1465 = vrcp.f32 %v1900_v0 }
  0xb6   :  { %v934_v62 = vrot.slane %v926_v55, 4  ;;  %v200_v63 = vsel %vm199_vm13, %v1456_v30, %v196_v57  ;;  %v824_v4 = vmul.f32 %v1458_v44, %v823_v58  ;;  %v208_v19 = vmul.f32 %v1464_v6, %v1850_v32  ;;  %vm843_vm4 = vmor %vm841_vm15, %vm842_vm3 }
  0xb7   :  { %v332_v8 = vrot.slane %v314_v60, 4  ;;  %v1893_v10 = vsel %vm1859_vm7, %v204_v43, %v200_v63  ;;  %v838_v16 = vsub.f32 1.0, %v837_v5  ;;  %vm213_vm5 = vweird.f32 %v1464_v6 }
  0xb8   :  { %v935_v12 = vadd.f32 %v934_v62, %v926_v55  ;;  %v312_v13 = vand.u32 2147483647, %v1893_v10  ;;  %v825_v15 = vadd.f32 %v1458_v44, %v824_v4  ;;  %v209_v26 = vsub.f32 1.0, %v208_v19  ;;  %vm214_vm6 = vmor %vm212_vm1, %vm213_vm5 }
  0xb9   :  { %v333_v17 = vadd.f32 %v332_v8, %v314_v60  ;;  %v839_v23 = vmul.f32 %v1462_v59, %v838_v16  ;;  %v219_v55 = vor.u32 1.1754944e-38, %v218_v36  ;;  %v164_v60 = vsub.f32 0.0, %v1853_v34 }
  0xba   :  { %v936_v20 = vrot.slane %v935_v12, 2  ;;  %v320_v21 = vrot.slane %v312_v13, 4  ;;  %v829_v22 = vsel %vm828_vm2, %v1458_v44, %v825_v15  ;;  %v210_v35 = vmul.f32 %v1464_v6, %v209_v26 }
  0xbb   :  { %v334_v24 = vrot.slane %v333_v17, 2  ;;  %v1909_v25 = vsel %vm1870_vm12, %v833_v52, %v829_v22  ;;  %v840_v30 = vadd.f32 %v1462_v59, %v839_v23  ;;  %v216_v44 = vand.u32 2147483647, %v1850_v32  ;;  %v1925_v48 = vpop.eup %1465 }
  0xbc   :  { %v937_v27 = vadd.f32 %v936_v20, %v935_v12  ;;  %v321_v28 = vadd.f32 %v320_v21, %v312_v13  ;;  %v927_v14 = vand.u32 2147483647, %v1909_v25  ;;  %v211_v43 = vadd.f32 %v1464_v6, %v210_v35 }
  0xbd   :  { %v335_v31 = vadd.f32 %v334_v24, %v333_v17  ;;  %v844_v40 = vsel %vm843_vm4, %v1462_v59, %v840_v30  ;;  %vm217_vm7 = vcmp.eq.f32.partialorder %v216_v44, 8.507059e+37  ;;  %v852_v32 = vmul.f32 %v1925_v48, %v1900_v0 }
  0xbe   :  { %v938_v37 = vrot.slane %v937_v27, 1  ;;  %v322_v38 = vrot.slane %v321_v28, 2  ;;  %v940_v39 = vrot.slane %v927_v14, 4  ;;  %v1919_v42 = vsel %vm1895_vm0, %v848_v18, %v844_v40 }
  0xbf   :  { %v336_v41 = vrot.slane %v335_v31, 1  ;;  %v928_v47 = vand.u32 2147483647, %v1919_v42  ;;  %v215_v51 = vsel %vm214_vm6, %v1464_v6, %v211_v43  ;;  %v853_v8 = vsub.f32 1.0, %v852_v32  ;;  %v142_v32 = vpop.xlane.xlu0 %141 }
  0xc0   :  { %v939_v45 = vadd.f32 %v938_v37, %v937_v27  ;;  %v323_v46 = vadd.f32 %v322_v38, %v321_v28  ;;  %v941_v29 = vadd.f32 %v940_v39, %v927_v14  ;;  %v1932_v59 = vsel %vm217_vm7, %v219_v55, %v215_v51 }
  0xc1   :  { %v337_v49 = vadd.f32 %v336_v41, %v335_v31  ;;  %v946_v58 = vrot.slane %v928_v47, 4  ;;  %v313_v4 = vand.u32 2147483647, %v1932_v59  ;;  %v176_v11 = vmul.f32 1.442695, %v164_v60 }
  0xc2   :  { %v1927_v52 = vadd.f32 1e-08, %v939_v45  ;;  %v324_v53 = vrot.slane %v323_v46, 1  ;;  %v942_v54 = vrot.slane %v941_v29, 2  ;;  %v854_v20 = vmul.f32 %v1925_v48, %v853_v8 }
  0xc3   :  { %v1929_v57 = vadd.f32 1e-08, %v337_v49  ;;  %v947_v63 = vadd.f32 %v946_v58, %v928_v47  ;;  %v326_v13 = vrot.slane %v313_v4, 4  ;;  %v860_v26 = vand.u32 2147483647, %v1900_v0 }
  0xc4   :  { %1467 = vrcp.f32 %v1927_v52  ;;  %v325_v61 = vadd.f32 %v324_v53, %v323_v46  ;;  %v943_v62 = vadd.f32 %v942_v54, %v941_v29  ;;  %vm856_vm8 = vweird.f32 %v1900_v0 }
  0xc5   :  { %1469 = vrcp.f32 %v1929_v57  ;;  %v948_v12 = vrot.slane %v947_v63, 2  ;;  %v327_v24 = vadd.f32 %v326_v13, %v313_v4  ;;  %v862_v28 = vand.u32 2147483648, %v1900_v0 }
  0xc6   :  { %v1939_v5 = vadd.f32 1e-08, %v325_v61  ;;  %v944_v6 = vrot.slane %v943_v62, 1  ;;  %vm857_vm9 = vweird.f32 %v1925_v48  ;;  %v999_v36 = vand.u32 2147483647, %v1927_v52 }
  0xc7   :  { %v949_v18 = vadd.f32 %v948_v12, %v947_v63  ;;  %v328_v35 = vrot.slane %v327_v24, 2  ;;  %v1001_v37 = vand.u32 2147483648, %v1927_v52  ;;  %v855_v39 = vadd.f32 %v1925_v48, %v854_v20  ;;  %vm1982_vm14 = vmor %vm856_vm8, %vm857_vm9 }
  0xc8   :  { %1471 = vrcp.f32 %v1939_v5  ;;  %v945_v17 = vadd.f32 %v944_v6, %v943_v62  ;;  %v415_v41 = vand.u32 2147483647, %v1929_v57  ;;  %vm1969_vm10 = vcmp.eq.f32.partialorder %v860_v26, 8.507059e+37  ;;  %v146_v6 = vpop.xlane.xlu1 %145 }
  0xc9   :  { %1473 = vpow2.f32 %v176_v11  ;;  %v950_v23 = vrot.slane %v949_v18, 1  ;;  %v329_v29 = vadd.f32 %v328_v35, %v327_v24  ;;  %v863_v47 = vor.u32 1.1754944e-38, %v862_v28 }
  0xca   :  { %v1941_v15 = vpop.eup %1467  ;;  %v1951_v22 = vadd.f32 1e-08, %v945_v17  ;;  %vm995_vm11 = vweird.f32 %v1927_v52  ;;  %vm411_vm13 = vweird.f32 %v1929_v57  ;;  %vm1988_vm15 = vcmp.eq.f32.partialorder %v999_v36, 8.507059e+37 }
  0xcb   :  { %v1944_v16 = vpop.eup %1469  ;;  %v991_v34 = vmul.f32 %v1941_v15, %v1927_v52  ;;  %v951_v31 = vadd.f32 %v950_v23, %v949_v18  ;;  %vm996_vm12 = vweird.f32 %v1941_v15  ;;  %v1002_v55 = vor.u32 1.1754944e-38, %v1001_v37 }
  0xcc   :  { %v407_v19 = vmul.f32 %v1944_v16, %v1929_v57  ;;  %1475 = vrcp.f32 %v1951_v22  ;;  %v417_v52 = vand.u32 2147483648, %v1929_v57  ;;  %v859_v58 = vsel %vm1982_vm14, %v1925_v48, %v855_v39  ;;  %vm2005_vm1 = vmor %vm995_vm11, %vm996_vm12 }
  0xcd   :  { %v992_v21 = vsub.f32 1.0, %v991_v34  ;;  %v1967_v43 = vadd.f32 1e-08, %v951_v31  ;;  %vm1996_vm0 = vcmp.eq.f32.partialorder %v415_v41, 8.507059e+37  ;;  %vm412_vm2 = vweird.f32 %v1944_v16 }
  0xce   :  { %v408_v27 = vsub.f32 1.0, %v407_v19  ;;  %v1957_v14 = vpop.eup %1471  ;;  %v330_v4 = vrot.slane %v329_v29, 1  ;;  %v2017_v12 = vsel %vm1969_vm10, %v863_v47, %v859_v58  ;;  %v155_v13 = vadd.f32 %v1815_v33, %v142_v32  ;;  %vm2025_vm3 = vmor %vm411_vm13, %vm412_vm2 }
  0xcf   :  { %v993_v30 = vmul.f32 %v1941_v15, %v992_v21  ;;  %v377_v38 = vmul.f32 %v1957_v14, %v1939_v5  ;;  %v1474_v40 = vpop.eup %1473  ;;  %1477 = vrcp.f32 %v1967_v43  ;;  %v385_v34 = vand.u32 2147483647, %v1939_v5 }
  0xd0   :  { %v409_v45 = vmul.f32 %v1944_v16, %v408_v27  ;;  %v2003_v61 = vadd.f32 1.0, %v1474_v40  ;;  %v387_v17 = vand.u32 2147483648, %v1939_v5  ;;  %v331_v18 = vadd.f32 %v330_v4, %v329_v29 }
  0xd1   :  { %v378_v46 = vsub.f32 1.0, %v377_v38  ;;  %v994_v49 = vadd.f32 %v1941_v15, %v993_v30  ;;  %v929_v19 = vand.u32 2147483647, %v2017_v12  ;;  %v1014_v21 = vand.u32 2147483647, %v1951_v22 }
  0xd2   :  { %v1986_v53 = vpop.eup %1475  ;;  %v410_v63 = vadd.f32 %v1944_v16, %v409_v45  ;;  %1479 = vrcp.f32 %v2003_v61  ;;  %v157_v23 = vadd.f32 %v1815_v33, %v146_v6  ;;  %vm382_vm4 = vweird.f32 %v1957_v14 }
  0xd3   :  { %v1006_v60 = vmul.f32 %v1986_v53, %v1951_v22  ;;  %v379_v48 = vmul.f32 %v1957_v14, %v378_v46  ;;  %v998_v8 = vsel %vm2005_vm1, %v1941_v15, %v994_v49  ;;  %v418_v15 = vor.u32 1.1754944e-38, %v417_v52 }
  0xd4   :  { %v1003_v24 = vsel %vm1988_vm15, %v1002_v55, %v998_v8  ;;  %v414_v26 = vsel %vm2025_vm3, %v1944_v16, %v410_v63  ;;  %v1016_v30 = vand.u32 2147483648, %v1951_v22  ;;  %v2043_v31 = vadd.f32 1e-08, %v331_v18  ;;  %v761_v55 = vpop.xlane.xlu2 %760 }
  0xd5   :  { %v1007_v11 = vsub.f32 1.0, %v1006_v60  ;;  %v380_v57 = vadd.f32 %v1957_v14, %v379_v48  ;;  %v2039_v27 = vpop.eup %1477  ;;  %v952_v35 = vrot.slane %v929_v19, 4  ;;  %vm381_vm5 = vweird.f32 %v1939_v5 }
  0xd6   :  { %vm2046_vm6 = vcmp.eq.f32.partialorder %v385_v34, 8.507059e+37  ;;  %v388_v16 = vor.u32 1.1754944e-38, %v387_v17  ;;  %v163_v37 = vsub.f32 0.0, %v155_v13  ;;  %v1004_v38 = vmul.f32 %v1003_v24, %v1876_v50  ;;  %vm2053_vm7 = vmor %vm381_vm5, %vm382_vm4  ;;  %v759_v34 = vpop.xlane.xlu0 %758 }
  0xd7   :  { %v1008_v28 = vmul.f32 %v1986_v53, %v1007_v11  ;;  %v419_v39 = vsel %vm1996_vm0, %v418_v15, %v414_v26  ;;  %1481 = vrcp.f32 %v2043_v31  ;;  %v165_v41 = vsub.f32 0.0, %v157_v23 }
  0xd8   :  { %v384_v5 = vsel %vm2053_vm7, %v1957_v14, %v380_v57  ;;  %vm1010_vm8 = vweird.f32 %v1951_v22  ;;  %vm2062_vm9 = vcmp.eq.f32.partialorder %v1014_v21, 8.507059e+37  ;;  %v1021_v50 = vmul.f32 %v2039_v27, %v1967_v43  ;;  %v1480_v45 = vpop.eup %1479 }
  0xd9   :  { %v1009_v46 = vadd.f32 %v1986_v53, %v1008_v28  ;;  %vm1011_vm10 = vweird.f32 %v1986_v53  ;;  %v1017_v29 = vor.u32 1.1754944e-38, %v1016_v30  ;;  %v953_v47 = vadd.f32 %v952_v35, %v929_v19 }
  0xda   :  { %v420_v49 = vmul.f32 %v419_v39, %v1882_v56  ;;  %v1029_v14 = vand.u32 2147483647, %v1967_v43  ;;  %v1031_v51 = vand.u32 2147483648, %v1967_v43  ;;  %v253_v54 = vmul.f32 %v1480_v45, %v2003_v61  ;;  %vm2082_vm12 = vmor %vm1010_vm8, %vm1011_vm10 }
  0xdb   :  { %v2075_v52 = vmul.f32 %v1004_v38, %v1800_v1  ;;  %v389_v58 = vsel %vm2046_vm6, %v388_v16, %v384_v5  ;;  %v954_v32 = vrot.slane %v953_v47, 2  ;;  %vm257_vm11 = vweird.f32 %v2003_v61  ;;  %v763_v38 = vpop.xlane.xlu1 %762 }
  0xdc   :  { %v1022_v0 = vsub.f32 1.0, %v1021_v50  ;;  %v254_v60 = vsub.f32 1.0, %v253_v54  ;;  %v174_v62 = vmul.f32 1.442695, %v163_v37  ;;  %v178_v63 = vmul.f32 1.442695, %v165_v41 }
  0xdd   :  { %v2086_v48 = vpop.eup %1481  ;;  %v1013_v1 = vsel %vm2082_vm12, %v1986_v53, %v1009_v46  ;;  %v955_v4 = vadd.f32 %v954_v32, %v953_v47  ;;  %v263_v6 = vand.u32 2147483648, %v2003_v61  ;;  %v771_v8 = vadd.f32 %v761_v55, %v1815_v33 }
  0xde   :  { %v392_v22 = vmul.f32 %v2086_v48, %v2043_v31  ;;  %v255_v11 = vmul.f32 %v1480_v45, %v254_v60  ;;  %vm258_vm13 = vweird.f32 %v1480_v45  ;;  %v261_v13 = vand.u32 2147483647, %v2003_v61 }
  0xdf   :  { %v390_v17 = vmul.f32 %v389_v58, %v1893_v10  ;;  %v956_v18 = vrot.slane %v955_v4, 1  ;;  %1483 = vpow2.f32 %v174_v62  ;;  %v779_v19 = vsub.f32 0.0, %v771_v8  ;;  %vm259_vm15 = vmor %vm257_vm11, %vm258_vm13  ;;  %v150_v58 = vpop.xlane.xlu2 %149 }
  0xe0   :  { %v1018_v53 = vsel %vm2062_vm9, %v1017_v29, %v1013_v1  ;;  %vm1025_vm14 = vweird.f32 %v1967_v43  ;;  %v393_v20 = vsub.f32 1.0, %v392_v22  ;;  %v256_v15 = vadd.f32 %v1480_v45, %v255_v11 }
  0xe1   :  { %1485 = vpow2.f32 %v178_v63  ;;  %v1023_v21 = vmul.f32 %v2039_v27, %v1022_v0  ;;  %v264_v23 = vor.u32 1.1754944e-38, %v263_v6  ;;  %v792_v24 = vmul.f32 1.442695, %v779_v19 }
  0xe2   :  { %v770_v10 = vadd.f32 %v759_v34, %v1815_v33  ;;  %v394_v26 = vmul.f32 %v2086_v48, %v393_v20  ;;  %v957_v57 = vadd.f32 %v956_v18, %v955_v4  ;;  %v260_v28 = vsel %vm259_vm15, %v1480_v45, %v256_v15 }
  0xe3   :  { %vm262_vm0 = vcmp.eq.f32.partialorder %v261_v13, 8.507059e+37  ;;  %v2106_v30 = vmul.f32 %v420_v49, %v1802_v2  ;;  %1487 = vpow2.f32 %v792_v24  ;;  %v496_v16 = vmul.f32 %v390_v17, %v1804_v3 }
  0xe4   :  { %v2108_v35 = vsel %vm262_vm0, %v264_v23, %v260_v28  ;;  %v778_v36 = vsub.f32 0.0, %v770_v10  ;;  %vm1026_vm1 = vweird.f32 %v2039_v27  ;;  %v400_v61 = vand.u32 2147483647, %v2043_v31 }
  0xe5   :  { %v316_v37 = vand.u32 2147483647, %v2108_v35  ;;  %v1484_v39 = vpop.eup %1483  ;;  %v1019_v40 = vmul.f32 %v1018_v53, %v1909_v25  ;;  %v395_v41 = vadd.f32 %v2086_v48, %v394_v26  ;;  %vm397_vm2 = vweird.f32 %v2086_v48  ;;  %vm2137_vm5 = vmor %vm1025_vm14, %vm1026_vm1 }
  0xe6   :  { %v402_v2 = vand.u32 2147483648, %v2043_v31  ;;  %v1024_v44 = vadd.f32 %v2039_v27, %v1023_v21  ;;  %v2119_v3 = vadd.f32 1e-08, %v957_v57  ;;  %v2121_v45 = vadd.f32 1.0, %v1484_v39 }
  0xe7   :  { %v1486_v5 = vpop.eup %1485  ;;  %v344_v50 = vrot.slane %v316_v37, 4  ;;  %vm396_vm3 = vweird.f32 %v2043_v31  ;;  %v790_v29 = vmul.f32 1.442695, %v778_v36  ;;  %v772_v25 = vadd.f32 %v763_v38, %v1815_v33 }
  0xe8   :  { %v2124_v46 = vadd.f32 1.0, %v1486_v5  ;;  %v1118_v47 = vrot.slane %v2075_v52, 4  ;;  %v504_v49 = vrot.slane %v496_v16, 4  ;;  %vm2128_vm4 = vmor %vm396_vm3, %vm397_vm2  ;;  %1489 = vrcp.f32 %v2121_v45 }
  0xe9   :  { %v345_v55 = vadd.f32 %v344_v50, %v316_v37  ;;  %v1488_v32 = vpop.eup %1487  ;;  %v399_v56 = vsel %vm2128_vm4, %v2086_v48, %v395_v41  ;;  %vm401_vm6 = vcmp.eq.f32.partialorder %v400_v61, 8.507059e+37  ;;  %v403_v0 = vor.u32 1.1754944e-38, %v402_v2 }
  0xea   :  { %1491 = vrcp.f32 %v2124_v46  ;;  %v2146_v60 = vmul.f32 %v1019_v40, %v1809_v7  ;;  %v1028_v62 = vsel %vm2137_vm5, %v2039_v27, %v1024_v44  ;;  %v2152_v1 = vadd.f32 1.0, %v1488_v32 }
  0xeb   :  { %1493 = vrcp.f32 %v2119_v3  ;;  %v346_v63 = vrot.slane %v345_v55, 2  ;;  %v780_v4 = vsub.f32 0.0, %v772_v25  ;;  %v159_v48 = vadd.f32 %v1815_v33, %v150_v58 }
  0xec   :  { %1495 = vpow2.f32 %v790_v29  ;;  %v1032_v6 = vor.u32 1.1754944e-38, %v1031_v51  ;;  %v404_v8 = vsel %vm401_vm6, %v403_v0, %v399_v56  ;;  %v2158_v7 = vadd.f32 %v1118_v47, %v2075_v52 }
  0xed   :  { %v347_v22 = vadd.f32 %v346_v63, %v345_v55  ;;  %v516_v11 = vrot.slane %v2106_v30, 4  ;;  %vm1030_vm7 = vcmp.eq.f32.partialorder %v1029_v14, 8.507059e+37  ;;  %1497 = vrcp.f32 %v2152_v1  ;;  %v148_v55 = vpop.xlane.xlu0 %147 }
  0xee   :  { %v1490_v27 = vpop.eup %1489  ;;  %v2164_v13 = vadd.f32 %v504_v49, %v496_v16  ;;  %v1124_v34 = vrot.slane %v2146_v60, 4  ;;  %v1033_v17 = vsel %vm1030_vm7, %v1032_v6, %v1028_v62  ;;  %v405_v19 = vmul.f32 %v404_v8, %v1932_v59 }
  0xef   :  { %v348_v18 = vrot.slane %v347_v22, 1  ;;  %v238_v52 = vmul.f32 %v1490_v27, %v2121_v45  ;;  %v794_v53 = vmul.f32 1.442695, %v780_v4  ;;  %v167_v20 = vsub.f32 0.0, %v159_v48 }
  0xf0   :  { %v1492_v51 = vpop.eup %1491  ;;  %v246_v14 = vand.u32 2147483647, %v2121_v45  ;;  %v248_v21 = vand.u32 2147483648, %v2121_v45  ;;  %v1046_v10 = vand.u32 2147483648, %v2119_v3  ;;  %v276_v57 = vand.u32 2147483647, %v2124_v46 }
  0xf1   :  { %v2169_v15 = vpop.eup %1493  ;;  %v349_v43 = vadd.f32 %v348_v18, %v347_v22  ;;  %v268_v23 = vmul.f32 %v1492_v51, %v2124_v46  ;;  %v239_v26 = vsub.f32 1.0, %v238_v52  ;;  %1499 = vpow2.f32 %v794_v53 }
  0xf2   :  { %v1496_v24 = vpop.eup %1495  ;;  %vm242_vm8 = vweird.f32 %v2121_v45  ;;  %vm272_vm9 = vweird.f32 %v2124_v46  ;;  %v278_v28 = vand.u32 2147483648, %v2124_v46  ;;  %v1036_v16 = vmul.f32 %v2169_v15, %v2119_v3 }
  0xf3   :  { %v269_v59 = vsub.f32 1.0, %v268_v23  ;;  %v1498_v36 = vpop.eup %1497  ;;  %v240_v61 = vmul.f32 %v1490_v27, %v239_v26  ;;  %vm243_vm10 = vweird.f32 %v1490_v27  ;;  %v2181_v37 = vadd.f32 1.0, %v1496_v24 }
  0xf4   :  { %v2184_v38 = vmul.f32 %v405_v19, %v1811_v9  ;;  %v2186_v39 = vadd.f32 1e-08, %v349_v43  ;;  %vm2188_vm11 = vcmp.eq.f32.partialorder %v246_v14, 8.507059e+37  ;;  %v249_v41 = vor.u32 1.1754944e-38, %v248_v21  ;;  %vm244_vm14 = vmor %vm242_vm8, %vm243_vm10 }
  0xf5   :  { %v241_v2 = vadd.f32 %v1490_v27, %v240_v61  ;;  %v270_v5 = vmul.f32 %v1492_v51, %v269_v59  ;;  %vm273_vm12 = vweird.f32 %v1492_v51  ;;  %vm2192_vm13 = vcmp.eq.f32.partialorder %v276_v57, 8.507059e+37 }
  0xf6   :  { %v279_v50 = vor.u32 1.1754944e-38, %v278_v28  ;;  %v882_v9 = vmul.f32 %v1498_v36, %v2152_v1  ;;  %vm886_vm15 = vweird.f32 %v2152_v1  ;;  %v182_v29 = vmul.f32 1.442695, %v167_v20  ;;  %vm274_vm0 = vmor %vm272_vm9, %vm273_vm12 }
  0xf7   :  { %v1500_v25 = vpop.eup %1499  ;;  %v1037_v47 = vsub.f32 1.0, %v1036_v16  ;;  %v245_v49 = vsel %vm244_vm14, %v1490_v27, %v241_v2  ;;  %v271_v54 = vadd.f32 %v1492_v51, %v270_v5  ;;  %1501 = vrcp.f32 %v2181_v37  ;;  %v765_v16 = vpop.xlane.xlu0 %764 }
  0xf8   :  { %1503 = vrcp.f32 %v2186_v39  ;;  %v2204_v58 = vsel %vm2188_vm11, %v249_v41, %v245_v49  ;;  %v883_v45 = vsub.f32 1.0, %v882_v9  ;;  %v890_v32 = vand.u32 2147483647, %v2152_v1 }
  0xf9   :  { %v315_v31 = vand.u32 2147483647, %v2204_v58  ;;  %v275_v56 = vsel %vm274_vm0, %v1492_v51, %v271_v54  ;;  %v892_v0 = vand.u32 2147483648, %v2152_v1  ;;  %v2212_v62 = vadd.f32 1.0, %v1500_v25 }
  0xfa   :  { %v2216_v63 = vsel %vm2192_vm13, %v279_v50, %v275_v56  ;;  %v884_v4 = vmul.f32 %v1498_v36, %v883_v45  ;;  %vm887_vm1 = vweird.f32 %v1498_v36  ;;  %1505 = vpow2.f32 %v182_v29 }
  0xfb   :  { %v2219_v46 = vadd.f32 %v1124_v34, %v2146_v60  ;;  %v2222_v48 = vmul.f32 %v1033_v17, %v1919_v42  ;;  %v338_v6 = vrot.slane %v315_v31, 4  ;;  %v317_v8 = vand.u32 2147483647, %v2216_v63  ;;  %vm888_vm3 = vmor %vm886_vm15, %vm887_vm1 }
  0xfc   :  { %v1038_v22 = vmul.f32 %v2169_v15, %v1037_v47  ;;  %v1044_v27 = vand.u32 2147483647, %v2119_v3  ;;  %v885_v18 = vadd.f32 %v1498_v36, %v884_v4  ;;  %1507 = vrcp.f32 %v2212_v62 }
  0xfd   :  { %v1502_v51 = vpop.eup %1501  ;;  %vm1040_vm2 = vweird.f32 %v2119_v3  ;;  %v2229_v19 = vor.u32 1.1754944e-38, %v1046_v10  ;;  %v339_v60 = vadd.f32 %v338_v6, %v315_v31  ;;  %v350_v34 = vrot.slane %v317_v8, 4 }
  0xfe   :  { %v893_v42 = vor.u32 1.1754944e-38, %v892_v0  ;;  %v2234_v17 = vpop.eup %1503  ;;  %v510_v52 = vrot.slane %v2184_v38, 4  ;;  %v889_v53 = vsel %vm888_vm3, %v1498_v36, %v885_v18  ;;  %vm891_vm4 = vcmp.eq.f32.partialorder %v890_v32, 8.507059e+37 }
  0xff   :  { %v867_v20 = vmul.f32 %v1502_v51, %v2181_v37  ;;  %vm1041_vm5 = vweird.f32 %v2169_v15  ;;  %v340_v43 = vrot.slane %v339_v60, 2  ;;  %v351_v14 = vadd.f32 %v350_v34, %v317_v8 }
 0x100   :  { %v2239_v21 = vsel %vm891_vm4, %v893_v42, %v889_v53  ;;  %v1506_v23 = vpop.eup %1505  ;;  %v1039_v24 = vadd.f32 %v2169_v15, %v1038_v22  ;;  %v875_v26 = vand.u32 2147483647, %v2181_v37  ;;  %v437_v57 = vmul.f32 %v2234_v17, %v2186_v39  ;;  %vm2264_vm10 = vmor %vm1040_vm2, %vm1041_vm5 }
 0x101   :  { %v931_v1 = vand.u32 2147483647, %v2239_v21  ;;  %v868_v10 = vsub.f32 1.0, %v867_v20  ;;  %v341_v59 = vadd.f32 %v340_v43, %v339_v60  ;;  %v352_v28 = vrot.slane %v351_v14, 2 }
 0x102   :  { %v877_v36 = vand.u32 2147483648, %v2181_v37  ;;  %v2247_v61 = vpop.eup %1507  ;;  %vm2249_vm6 = vcmp.eq.f32.partialorder %v1044_v27, 8.507059e+37  ;;  %vm872_vm7 = vweird.f32 %v1502_v51  ;;  %v2253_v5 = vadd.f32 1.0, %v1506_v23 }
 0x103   :  { %v964_v41 = vrot.slane %v931_v1, 4  ;;  %v869_v2 = vmul.f32 %v1502_v51, %v868_v10  ;;  %v342_v44 = vrot.slane %v341_v59, 1  ;;  %v353_v50 = vadd.f32 %v352_v28, %v351_v14 }
 0x104   :  { %v897_v9 = vmul.f32 %v2247_v61, %v2212_v62  ;;  %v158_v29 = vadd.f32 %v1815_v33, %v148_v55  ;;  %vm871_vm8 = vweird.f32 %v2181_v37  ;;  %v773_v49 = vadd.f32 %v765_v16, %v1815_v33 }
 0x105   :  { %v965_v25 = vadd.f32 %v964_v41, %v931_v1  ;;  %v870_v47 = vadd.f32 %v1502_v51, %v869_v2  ;;  %v343_v54 = vadd.f32 %v342_v44, %v341_v59  ;;  %v354_v45 = vrot.slane %v353_v50, 1  ;;  %vm873_vm9 = vmor %vm871_vm8, %vm872_vm7 }
 0x106   :  { %v878_v32 = vor.u32 1.1754944e-38, %v877_v36  ;;  %v898_v31 = vsub.f32 1.0, %v897_v9  ;;  %v438_v55 = vsub.f32 1.0, %v437_v57  ;;  %vm876_vm11 = vcmp.eq.f32.partialorder %v875_v26, 8.507059e+37 }
 0x107   :  { %v874_v0 = vsel %vm873_vm9, %v1502_v51, %v870_v47  ;;  %1509 = vrcp.f32 %v2253_v5  ;;  %v1043_v33 = vsel %vm2264_vm10, %v2169_v15, %v1039_v24  ;;  %v2272_v37 = vadd.f32 1e-08, %v343_v54 }
 0x108   :  { %v2274_v4 = vsel %vm876_vm11, %v878_v32, %v874_v0  ;;  %v899_v6 = vmul.f32 %v2247_v61, %v898_v31  ;;  %v445_v3 = vand.u32 2147483647, %v2186_v39  ;;  %v447_v8 = vand.u32 2147483648, %v2186_v39 }
 0x109   :  { %v966_v22 = vrot.slane %v965_v25, 2  ;;  %v930_v27 = vand.u32 2147483647, %v2274_v4  ;;  %1511 = vrcp.f32 %v2272_v37  ;;  %v355_v18 = vadd.f32 %v354_v45, %v353_v50 }
 0x10a   :  { %v905_v51 = vand.u32 2147483647, %v2212_v62  ;;  %v166_v60 = vsub.f32 0.0, %v158_v29  ;;  %v439_v15 = vmul.f32 %v2234_v17, %v438_v55  ;;  %v907_v42 = vand.u32 2147483648, %v2212_v62 }
 0x10b   :  { %v958_v34 = vrot.slane %v930_v27, 4  ;;  %v781_v53 = vsub.f32 0.0, %v773_v49  ;;  %v2287_v20 = vsel %vm2249_vm6, %v2229_v19, %v1043_v33  ;;  %v900_v43 = vadd.f32 %v2247_v61, %v899_v6 }
 0x10c   :  { %vm901_vm12 = vweird.f32 %v2212_v62  ;;  %vm902_vm13 = vweird.f32 %v2247_v61  ;;  %vm442_vm14 = vweird.f32 %v2234_v17  ;;  %v2293_v23 = vor.u32 1.1754944e-38, %v447_v8 }
 0x10d   :  { %v1510_v14 = vpop.eup %1509  ;;  %v967_v24 = vadd.f32 %v966_v22, %v965_v25  ;;  %v959_v1 = vadd.f32 %v958_v34, %v930_v27  ;;  %vm441_vm15 = vweird.f32 %v2186_v39  ;;  %v2296_v10 = vadd.f32 1e-08, %v355_v18  ;;  %vm2304_vm1 = vmor %vm901_vm12, %vm902_vm13  ;;  %v1571_v39 = vld [vmem:[#allocation6 + $0x10] sm:$0xff] }
 0x10e   :  { %vm2298_vm0 = vcmp.eq.f32.partialorder %v905_v51, 8.507059e+37  ;;  %v298_v26 = vmul.f32 %v1510_v14, %v2253_v5  ;;  %v180_v62 = vmul.f32 1.442695, %v166_v60  ;;  %v440_v57 = vadd.f32 %v2234_v17, %v439_v15  ;;  %vm2330_vm8 = vmor %vm441_vm15, %vm442_vm14 }
 0x10f   :  { %v960_v59 = vrot.slane %v959_v1, 2  ;;  %v908_v36 = vor.u32 1.1754944e-38, %v907_v42  ;;  %v796_v16 = vmul.f32 1.442695, %v781_v53  ;;  %v1512_v40 = vpop.eup %1511  ;;  %v904_v41 = vsel %vm2304_vm1, %v2247_v61, %v900_v43 }
 0x110   :  { %v299_v2 = vsub.f32 1.0, %v298_v26  ;;  %v308_v44 = vand.u32 2147483648, %v2253_v5  ;;  %1513 = vpow2.f32 %v180_v62  ;;  %v422_v50 = vmul.f32 %v1512_v40, %v2272_v37 }
 0x111   :  { %v968_v9 = vrot.slane %v967_v24, 1  ;;  %v961_v29 = vadd.f32 %v960_v59, %v959_v1  ;;  %vm302_vm2 = vweird.f32 %v2253_v5  ;;  %1515 = vrcp.f32 %v2296_v10 }
 0x112   :  { %v300_v25 = vmul.f32 %v1510_v14, %v299_v2  ;;  %vm303_vm3 = vweird.f32 %v1510_v14  ;;  %v306_v47 = vand.u32 2147483647, %v2253_v5  ;;  %v423_v49 = vsub.f32 1.0, %v422_v50 }
 0x113   :  { %v962_v54 = vrot.slane %v961_v29, 1  ;;  %1517 = vpow2.f32 %v796_v16  ;;  %v2318_v61 = vsel %vm2298_vm0, %v908_v36, %v904_v41  ;;  %v430_v45 = vand.u32 2147483647, %v2272_v37  ;;  %vm304_vm5 = vmor %vm302_vm2, %vm303_vm3 }
 0x114   :  { %v432_v32 = vand.u32 2147483648, %v2272_v37  ;;  %v301_v31 = vadd.f32 %v1510_v14, %v300_v25  ;;  %v309_v56 = vor.u32 1.1754944e-38, %v308_v44  ;;  %v424_v55 = vmul.f32 %v1512_v40, %v423_v49 }
 0x115   :  { %vm427_vm4 = vweird.f32 %v1512_v40  ;;  %v969_v0 = vadd.f32 %v968_v9, %v967_v24  ;;  %v963_v33 = vadd.f32 %v962_v54, %v961_v29  ;;  %vm426_vm6 = vweird.f32 %v2272_v37 }
 0x116   :  { %v1514_v6 = vpop.eup %1513  ;;  %vm307_vm7 = vcmp.eq.f32.partialorder %v306_v47, 8.507059e+37  ;;  %v305_v8 = vsel %vm304_vm5, %v1510_v14, %v301_v31  ;;  %v932_v22 = vand.u32 2147483647, %v2318_v61  ;;  %v425_v18 = vadd.f32 %v1512_v40, %v424_v55  ;;  %vm428_vm9 = vmor %vm426_vm6, %vm427_vm4 }
 0x117   :  { %v2334_v51 = vadd.f32 1e-08, %v963_v33  ;;  %v2336_v5 = vadd.f32 1.0, %v1514_v6  ;;  %v2338_v60 = vsel %vm307_vm7, %v309_v56, %v305_v8  ;;  %v2340_v37 = vpop.eup %1515  ;;  %v444_v15 = vsel %vm2330_vm8, %v2234_v17, %v440_v57  ;;  %v1573_v8 = vld [vmem:[#allocation5 + $0x20] sm:$0xff] }
 0x118   :  { %vm431_vm10 = vcmp.eq.f32.partialorder %v430_v45, 8.507059e+37  ;;  %v433_v34 = vor.u32 1.1754944e-38, %v432_v32  ;;  %v319_v42 = vand.u32 2147483647, %v2338_v60  ;;  %v429_v43 = vsel %vm428_vm9, %v1512_v40, %v425_v18 }
 0x119   :  { %v1518_v53 = vpop.eup %1517  ;;  %v2347_v14 = vadd.f32 1e-08, %v969_v0  ;;  %1519 = vrcp.f32 %v2334_v51  ;;  %v517_v24 = vadd.f32 %v516_v11, %v2106_v30  ;;  %vm446_vm11 = vcmp.eq.f32.partialorder %v445_v3, 8.507059e+37 }
 0x11a   :  { %v434_v17 = vsel %vm431_vm10, %v433_v34, %v429_v43  ;;  %1521 = vrcp.f32 %v2336_v5  ;;  %v970_v1 = vrot.slane %v932_v22, 4  ;;  %v449_v19 = vsel %vm446_vm11, %v2293_v23, %v444_v15 }
 0x11b   :  { %v435_v26 = vmul.f32 %v434_v17, %v2204_v58  ;;  %v460_v62 = vand.u32 2147483647, %v2296_v10  ;;  %v462_v57 = vand.u32 2147483648, %v2296_v10  ;;  %v2360_v59 = vadd.f32 1.0, %v1518_v53 }
 0x11c   :  { %v362_v28 = vrot.slane %v319_v42, 4  ;;  %v452_v30 = vmul.f32 %v2340_v37, %v2296_v10  ;;  %v506_v11 = vrot.slane %v2164_v13, 2  ;;  %v2366_v3 = vmul.f32 %v1571_v39, %v2222_v48  ;;  %v1574_v39 = vld [vmem:[#allocation5 + $0x28] sm:$0xff] }
 0x11d   :  { %v511_v58 = vadd.f32 %v510_v52, %v2184_v38  ;;  %1523 = vrcp.f32 %v2347_v14  ;;  %v518_v23 = vrot.slane %v517_v24, 2  ;;  %v2374_v36 = vmul.f32 %v2287_v20, %v2017_v12  ;;  %v1572_v38 = vld [vmem:[#allocation5 + $0x18] sm:$0xff] }
 0x11e   :  { %v450_v16 = vmul.f32 %v449_v19, %v2108_v35  ;;  %1525 = vrcp.f32 %v2360_v59  ;;  %v2378_v40 = vadd.f32 %v970_v1, %v932_v22  ;;  %v363_v48 = vadd.f32 %v362_v28, %v319_v42 }
 0x11f   :  { %v2380_v41 = vpop.eup %1519  ;;  %v453_v2 = vsub.f32 1.0, %v452_v30  ;;  %vm456_vm12 = vweird.f32 %v2296_v10  ;;  %v499_v52 = vmul.f32 %v1572_v38, %v435_v26  ;;  %vm2385_vm13 = vcmp.eq.f32.partialorder %v460_v62, 8.507059e+37 }
 0x120   :  { %v1522_v44 = vpop.eup %1521  ;;  %v1051_v50 = vmul.f32 %v2380_v41, %v2334_v51  ;;  %v463_v35 = vor.u32 1.1754944e-38, %v462_v57  ;;  %v2390_v20 = vadd.f32 %v506_v11, %v2164_v13  ;;  %v364_v29 = vrot.slane %v363_v48, 2 }
 0x121   :  { %v283_v9 = vmul.f32 %v1522_v44, %v2336_v5  ;;  %v454_v25 = vmul.f32 %v2340_v37, %v453_v2  ;;  %v2394_v47 = vadd.f32 %v518_v23, %v517_v24  ;;  %v1059_v54 = vand.u32 2147483647, %v2334_v51 }
 0x122   :  { %v1052_v49 = vsub.f32 1.0, %v1051_v50  ;;  %vm457_vm14 = vweird.f32 %v2340_v37  ;;  %v972_v45 = vrot.slane %v2378_v40, 2  ;;  %v365_v56 = vadd.f32 %v364_v29, %v363_v48 }
 0x123   :  { %v2399_v32 = vpop.eup %1523  ;;  %v284_v31 = vsub.f32 1.0, %v283_v9  ;;  %v455_v13 = vadd.f32 %v2340_v37, %v454_v25  ;;  %v522_v55 = vrot.slane %v499_v52, 4  ;;  %vm1055_vm15 = vweird.f32 %v2334_v51  ;;  %vm458_vm1 = vmor %vm456_vm12, %vm457_vm14 }
 0x124   :  { %v2402_v0 = vpop.eup %1525  ;;  %vm288_vm0 = vweird.f32 %v1522_v44  ;;  %v291_v33 = vand.u32 2147483647, %v2336_v5  ;;  %v293_v6 = vand.u32 2147483648, %v2336_v5  ;;  %v500_v22 = vmul.f32 %v1573_v8, %v450_v16 }
 0x125   :  { %v285_v27 = vmul.f32 %v1522_v44, %v284_v31  ;;  %v912_v18 = vmul.f32 %v2402_v0, %v2360_v59  ;;  %v366_v15 = vrot.slane %v365_v56, 1  ;;  %v512_v34 = vrot.slane %v511_v58, 2 }
 0x126   :  { %v1053_v42 = vmul.f32 %v2380_v41, %v1052_v49  ;;  %vm287_vm2 = vweird.f32 %v2336_v5  ;;  %v459_v53 = vsel %vm458_vm1, %v2340_v37, %v455_v13  ;;  %v523_v43 = vadd.f32 %v522_v55, %v499_v52 }
 0x127   :  { %v286_v24 = vadd.f32 %v1522_v44, %v285_v27  ;;  %v913_v17 = vsub.f32 1.0, %v912_v18  ;;  %v367_v1 = vadd.f32 %v366_v15, %v365_v56  ;;  %v464_v19 = vsel %vm2385_vm13, %v463_v35, %v459_v53  ;;  %vm289_vm3 = vmor %vm287_vm2, %vm288_vm0 }
 0x128   :  { %v1061_v26 = vand.u32 2147483648, %v2334_v51  ;;  %vm292_vm4 = vcmp.eq.f32.partialorder %v291_v33, 8.507059e+37  ;;  %v294_v10 = vor.u32 1.1754944e-38, %v293_v6  ;;  %v465_v62 = vmul.f32 %v464_v19, %v2216_v63 }
 0x129   :  { %v290_v57 = vsel %vm289_vm3, %v1522_v44, %v286_v24  ;;  %v2421_v28 = vadd.f32 1e-08, %v367_v1  ;;  %v513_v5 = vadd.f32 %v512_v34, %v511_v58  ;;  %v528_v37 = vrot.slane %v500_v22, 4 }
 0x12a   :  { %v1054_v30 = vadd.f32 %v2380_v41, %v1053_v42  ;;  %vm1056_vm5 = vweird.f32 %v2380_v41  ;;  %v2425_v11 = vsel %vm292_vm4, %v294_v10, %v290_v57  ;;  %v501_v23 = vmul.f32 %v1574_v39, %v465_v62 }
 0x12b   :  { %v914_v16 = vmul.f32 %v2402_v0, %v913_v17  ;;  %v318_v48 = vand.u32 2147483647, %v2425_v11  ;;  %1527 = vrcp.f32 %v2421_v28  ;;  %v524_v63 = vrot.slane %v523_v43, 2  ;;  %vm2436_vm6 = vmor %vm1055_vm15, %vm1056_vm5 }
 0x12c   :  { %v920_v2 = vand.u32 2147483647, %v2360_v59  ;;  %v922_v58 = vand.u32 2147483648, %v2360_v59  ;;  %v508_v38 = vrot.slane %v2390_v20, 1  ;;  %v520_v52 = vrot.slane %v2394_v47, 1 }
 0x12d   :  { %vm2440_vm7 = vcmp.eq.f32.partialorder %v1059_v54, 8.507059e+37  ;;  %v356_v12 = vrot.slane %v318_v48, 4  ;;  %v514_v35 = vrot.slane %v513_v5, 1  ;;  %v529_v9 = vadd.f32 %v528_v37, %v500_v22 }
 0x12e   :  { %v1058_v29 = vsel %vm2436_vm6, %v2380_v41, %v1054_v30  ;;  %v1062_v25 = vor.u32 1.1754944e-38, %v1061_v26  ;;  %vm916_vm8 = vweird.f32 %v2360_v59  ;;  %v534_v49 = vrot.slane %v501_v23, 4 }
 0x12f   :  { %v915_v51 = vadd.f32 %v2402_v0, %v914_v16  ;;  %vm917_vm9 = vweird.f32 %v2402_v0  ;;  %v357_v31 = vadd.f32 %v356_v12, %v318_v48  ;;  %v525_v54 = vadd.f32 %v524_v63, %v523_v43 }
 0x130   :  { %vm2450_vm10 = vcmp.eq.f32.partialorder %v920_v2, 8.507059e+37  ;;  %v923_v13 = vor.u32 1.1754944e-38, %v922_v58  ;;  %v2455_v55 = vadd.f32 %v508_v38, %v2390_v20  ;;  %v2458_v41 = vadd.f32 %v520_v52, %v2394_v47  ;;  %vm918_vm11 = vmor %vm916_vm8, %vm917_vm9 }
 0x131   :  { %v1528_v33 = vpop.eup %1527  ;;  %v2462_v6 = vsel %vm2440_vm7, %v1062_v25, %v1058_v29  ;;  %v358_v8 = vrot.slane %v357_v31, 2  ;;  %v2464_v22 = vadd.f32 %v514_v35, %v513_v5  ;;  %v530_v27 = vrot.slane %v529_v9, 2 }
 0x132   :  { %v482_v18 = vmul.f32 %v1528_v33, %v2421_v28  ;;  %vm486_vm12 = vweird.f32 %v2421_v28  ;;  %v490_v20 = vand.u32 2147483647, %v2421_v28  ;;  %v535_v47 = vadd.f32 %v534_v49, %v501_v23 }
 0x133   :  { %v359_v15 = vadd.f32 %v358_v8, %v357_v31  ;;  %v492_v34 = vand.u32 2147483648, %v2421_v28  ;;  %v526_v42 = vrot.slane %v525_v54, 1  ;;  %v919_v53 = vsel %vm918_vm11, %v2402_v0, %v915_v51 }
 0x134   :  { %v483_v43 = vsub.f32 1.0, %v482_v18  ;;  %v552_v24 = vmul.f32 %v2455_v55, %v2455_v55  ;;  %v2477_v59 = vsel %vm2450_vm10, %v923_v13, %v919_v53  ;;  %v973_v17 = vadd.f32 %v972_v45, %v2378_v40  ;;  %v1575_v13 = vld [vmem:[#allocation5 + $0x38] sm:$0xff] }
 0x135   :  { %v360_v1 = vrot.slane %v359_v15, 1  ;;  %v531_v19 = vadd.f32 %v530_v27, %v529_v9  ;;  %v933_v26 = vand.u32 2147483647, %v2477_v59  ;;  %v1066_v10 = vmul.f32 %v2399_v32, %v2347_v14 }
 0x136   :  { %v484_v0 = vmul.f32 %v1528_v33, %v483_v43  ;;  %vm487_vm13 = vweird.f32 %v1528_v33  ;;  %v536_v62 = vrot.slane %v535_v47, 2  ;;  %v974_v57 = vrot.slane %v973_v17, 1 }
 0x137   :  { %v361_v5 = vadd.f32 %v360_v1, %v359_v15  ;;  %v2485_v37 = vadd.f32 %v526_v42, %v525_v54  ;;  %v976_v30 = vrot.slane %v933_v26, 4  ;;  %v1067_v39 = vsub.f32 1.0, %v1066_v10  ;;  %vm488_vm15 = vmor %vm486_vm12, %vm487_vm13 }
 0x138   :  { %v485_v23 = vadd.f32 %v1528_v33, %v484_v0  ;;  %vm2487_vm14 = vcmp.eq.f32.partialorder %v490_v20, 8.507059e+37  ;;  %v553_v40 = vmul.f32 %v2464_v22, %v2464_v22  ;;  %v975_v45 = vadd.f32 %v974_v57, %v973_v17 }
 0x139   :  { %v2493_v48 = vadd.f32 1e-08, %v361_v5  ;;  %vm568_vm0 = vcmask 1041409   ;;  %v977_v63 = vadd.f32 %v976_v30, %v933_v26  ;;  %v1068_v2 = vmul.f32 %v2399_v32, %v1067_v39 }
 0x13a   :  { %v489_v58 = vsel %vm488_vm15, %v1528_v33, %v485_v23  ;;  %v493_v38 = vor.u32 1.1754944e-38, %v492_v34  ;;  %v532_v52 = vrot.slane %v531_v19, 1  ;;  %v537_v44 = vadd.f32 %v536_v62, %v535_v47 }
 0x13b   :  { %1529 = vrcp.f32 %v2493_v48  ;;  %v554_v50 = vmul.f32 %v2458_v41, %v2458_v41  ;;  %v555_v12 = vmul.f32 %v2485_v37, %v2485_v37  ;;  %v2503_v35 = vadd.f32 1e-08, %v975_v45 }
 0x13c   :  { %v494_v28 = vsel %vm2487_vm14, %v493_v38, %v489_v58  ;;  %v569_v9 = vsel %vm568_vm0, %v553_v40, %v552_v24  ;;  %vm570_vm1 = vcmask 1042434   ;;  %v978_v29 = vrot.slane %v977_v63, 2 }
 0x13d   :  { %v495_v25 = vmul.f32 %v494_v28, %v2338_v60  ;;  %vm3067_vm2 = vcmask 1043459   ;;  %v1069_v49 = vadd.f32 %v2399_v32, %v1068_v2  ;;  %vm1071_vm3 = vweird.f32 %v2399_v32 }
 0x13e   :  { %v2511_v51 = vadd.f32 %v532_v52, %v531_v19  ;;  %v538_v31 = vrot.slane %v537_v44, 1  ;;  %v979_v54 = vadd.f32 %v978_v29, %v977_v63  ;;  %v1076_v56 = vand.u32 2147483648, %v2347_v14  ;;  %v1576_v19 = vld [vmem:[#allocation6 + $0x18] sm:$0xff]  ;;  %v1577_v52 = vld [vmem:[#allocation6 + $0x20] sm:$0xff] }
 0x13f   :  { %v503_v33 = vmul.f32 %v1575_v13, %v495_v25  ;;  %vm1070_vm4 = vweird.f32 %v2347_v14  ;;  %v1074_v8 = vand.u32 2147483647, %v2347_v14  ;;  %1531 = vrcp.f32 %v2503_v35 }
 0x140   :  { %v1130_v60 = vrot.slane %v2366_v3, 4  ;;  %v1064_v27 = vmul.f32 %v2462_v6, %v2274_v4  ;;  %v571_v18 = vsel %vm570_vm1, %v554_v50, %v569_v9  ;;  %v980_v20 = vrot.slane %v979_v54, 1  ;;  %vm2521_vm5 = vmor %vm1070_vm4, %vm1071_vm3 }
 0x141   :  { %v1530_v15 = vpop.eup %1529  ;;  %v475_v34 = vand.u32 2147483647, %v2493_v48  ;;  %v546_v42 = vrot.slane %v503_v33, 4  ;;  %v2527_v14 = vsel %vm3067_vm2, %v555_v12, %v571_v18  ;;  %v1073_v53 = vsel %vm2521_vm5, %v2399_v32, %v1069_v49 }
 0x142   :  { %v467_v4 = vmul.f32 %v1530_v15, %v2493_v48  ;;  %v2535_v6 = vmul.f32 %v2511_v51, %v2511_v51  ;;  %v981_v43 = vadd.f32 %v980_v20, %v979_v54  ;;  %v1077_v24 = vor.u32 1.1754944e-38, %v1076_v56  ;;  %v1579_v20 = vld [vmem:[#allocation5 + $0x30] sm:$0xff] }
 0x143   :  { %v477_v17 = vand.u32 2147483648, %v2493_v48  ;;  %v2538_v1 = vadd.f32 %v538_v31, %v537_v44  ;;  %vm1075_vm6 = vcmp.eq.f32.partialorder %v1074_v8, 8.507059e+37  ;;  %v1113_v26 = vmul.f32 %v1576_v19, %v2374_v36 }
 0x144   :  { %v468_v10 = vsub.f32 1.0, %v467_v4  ;;  %v547_v0 = vadd.f32 %v546_v42, %v503_v33  ;;  %v2541_v62 = vadd.f32 1e-08, %v981_v43  ;;  %v1078_v32 = vsel %vm1075_vm6, %v1077_v24, %v1073_v53 }
 0x145   :  { %v1532_v57 = vpop.eup %1531  ;;  %vm471_vm7 = vweird.f32 %v2493_v48  ;;  %vm2544_vm8 = vcmp.eq.f32.partialorder %v475_v34, 8.507059e+37  ;;  %v1089_v30 = vand.u32 2147483647, %v2503_v35  ;;  %v1091_v39 = vand.u32 2147483648, %v2503_v35  ;;  %v1578_v48 = vld [vmem:[#allocation6 + $0x28] sm:$0xff] }
 0x146   :  { %v469_v23 = vmul.f32 %v1530_v15, %v468_v10  ;;  %vm472_vm9 = vweird.f32 %v1530_v15  ;;  %v1081_v36 = vmul.f32 %v1532_v57, %v2503_v35  ;;  %1533 = vrcp.f32 %v2541_v62 }
 0x147   :  { %v478_v16 = vor.u32 1.1754944e-38, %v477_v17  ;;  %v1079_v40 = vmul.f32 %v1078_v32, %v2239_v21  ;;  %v1120_v45 = vrot.slane %v2158_v7, 2  ;;  %v1136_v63 = vrot.slane %v1113_v26, 4  ;;  %vm473_vm10 = vmor %vm471_vm7, %vm472_vm9 }
 0x148   :  { %v470_v2 = vadd.f32 %v1530_v15, %v469_v23  ;;  %v548_v58 = vrot.slane %v547_v0, 2  ;;  %v1082_v38 = vsub.f32 1.0, %v1081_v36  ;;  %v1114_v44 = vmul.f32 %v1577_v52, %v1064_v27 }
 0x149   :  { %vm1085_vm11 = vweird.f32 %v2503_v35  ;;  %vm2557_vm12 = vcmp.eq.f32.partialorder %v1089_v30, 8.507059e+37  ;;  %v1092_v12 = vor.u32 1.1754944e-38, %v1091_v39  ;;  %v1126_v21 = vrot.slane %v2219_v46, 2 }
 0x14a   :  { %v474_v28 = vsel %vm473_vm10, %v1530_v15, %v470_v2  ;;  %vm3066_vm13 = vcmask 1044484   ;;  %v1083_v9 = vmul.f32 %v1532_v57, %v1082_v38  ;;  %vm1086_vm14 = vweird.f32 %v1532_v57 }
 0x14b   :  { %v1131_v29 = vadd.f32 %v1130_v60, %v2366_v3  ;;  %v479_v25 = vsel %vm2544_vm8, %v478_v16, %v474_v28  ;;  %v1115_v49 = vmul.f32 %v1578_v48, %v1079_v40  ;;  %v1121_v31 = vadd.f32 %v1120_v45, %v2158_v7  ;;  %vm1087_vm15 = vmor %vm1085_vm11, %vm1086_vm14 }
 0x14c   :  { %v1137_v54 = vadd.f32 %v1136_v63, %v1113_v26  ;;  %v1534_v56 = vpop.eup %1533  ;;  %v480_v13 = vmul.f32 %v479_v25, %v2425_v11  ;;  %v549_v33 = vadd.f32 %v548_v58, %v547_v0  ;;  %v1084_v8 = vadd.f32 %v1532_v57, %v1083_v9  ;;  %v1580_v0 = vld [vmem:[#allocation6 + $0x30] sm:$0xff] }
 0x14d   :  { %v1142_v27 = vrot.slane %v1114_v44, 4  ;;  %v1096_v18 = vmul.f32 %v1534_v56, %v2541_v62  ;;  %vm1100_vm3 = vweird.f32 %v2541_v62  ;;  %v1104_v3 = vand.u32 2147483647, %v2541_v62 }
 0x14e   :  { %v1127_v60 = vadd.f32 %v1126_v21, %v2219_v46  ;;  %v502_v7 = vmul.f32 %v1579_v20, %v480_v13  ;;  %v1088_v47 = vsel %vm1087_vm15, %v1532_v57, %v1084_v8  ;;  %v1132_v15 = vrot.slane %v1131_v29, 2 }
 0x14f   :  { %v1143_v34 = vadd.f32 %v1142_v27, %v1114_v44  ;;  %v1093_v11 = vsel %vm2557_vm12, %v1092_v12, %v1088_v47  ;;  %v1097_v42 = vsub.f32 1.0, %v1096_v18  ;;  %v1138_v53 = vrot.slane %v1137_v54, 2 }
 0x150   :  { %v1148_v35 = vrot.slane %v1115_v49, 4  ;;  %v540_v4 = vrot.slane %v502_v7, 4  ;;  %v1094_v43 = vmul.f32 %v1093_v11, %v2318_v61  ;;  %v1106_v24 = vand.u32 2147483648, %v2541_v62 }
 0x151   :  { %v1144_v17 = vrot.slane %v1143_v34, 2  ;;  %v1098_v19 = vmul.f32 %v1534_v56, %v1097_v42  ;;  %vm1101_vm4 = vweird.f32 %v1534_v56  ;;  %v1128_v46 = vrot.slane %v1127_v60, 1 }
 0x152   :  { %v1149_v26 = vadd.f32 %v1148_v35, %v1115_v49  ;;  %v541_v10 = vadd.f32 %v540_v4, %v502_v7  ;;  %vm3065_vm5 = vcmask 1045509   ;;  %v1116_v32 = vmul.f32 %v1580_v0, %v1094_v43  ;;  %vm1102_vm6 = vmor %vm1100_vm3, %vm1101_vm4 }
 0x153   :  { %v1122_v57 = vrot.slane %v1121_v31, 1  ;;  %v1133_v5 = vadd.f32 %v1132_v15, %v1131_v29  ;;  %v550_v30 = vrot.slane %v549_v33, 1  ;;  %v1099_v39 = vadd.f32 %v1534_v56, %v1098_v19 }
 0x154   :  { %v1139_v23 = vadd.f32 %v1138_v53, %v1137_v54  ;;  %v1150_v36 = vrot.slane %v1149_v26, 2  ;;  %v542_v16 = vrot.slane %v541_v10, 2  ;;  %v1107_v61 = vor.u32 1.1754944e-38, %v1106_v24 }
 0x155   :  { %v1145_v40 = vadd.f32 %v1144_v17, %v1143_v34  ;;  %v1154_v45 = vrot.slane %v1116_v32, 4  ;;  %v575_v63 = vsel %vm3066_vm13, %v2535_v6, %v2527_v14  ;;  %v1103_v2 = vsel %vm1102_vm6, %v1534_v56, %v1099_v39  ;;  %v1581_v6 = vld [vmem:[#allocation6 + $0x38] sm:$0xff] }
 0x156   :  { %vm1105_vm7 = vcmp.eq.f32.partialorder %v1104_v3, 8.507059e+37  ;;  %v2582_v58 = vadd.f32 %v1128_v46, %v1127_v60  ;;  %v543_v38 = vadd.f32 %v542_v16, %v541_v10  ;;  %v1134_v44 = vrot.slane %v1133_v5, 1  ;;  %v1364_v16 = vld [vmem:[#allocation11 + $0x78] sm:$0xff] }
 0x157   :  { %v1108_v52 = vsel %vm1105_vm7, %v1107_v61, %v1103_v2  ;;  %v1155_v50 = vadd.f32 %v1154_v45, %v1116_v32  ;;  %v2584_v12 = vadd.f32 %v550_v30, %v549_v33  ;;  %v1140_v21 = vrot.slane %v1139_v23, 1  ;;  %v1363_v61 = vld [vmem:[#allocation11 + $0x70] sm:$0xff]  ;;  %1388 = vmatpush.msra.mxu0 %v1364_v16  ;;  %v1361_v45 = vld [vmem:[#allocation11 + $0x60] sm:$0xff] }
 0x158   :  { %v1109_v62 = vmul.f32 %v1108_v52, %v2477_v59  ;;  %v1151_v28 = vadd.f32 %v1150_v36, %v1149_v26  ;;  %v544_v9 = vrot.slane %v543_v38, 1  ;;  %v2587_v29 = vadd.f32 %v1122_v57, %v1121_v31  ;;  %v1359_v52 = vld [vmem:[#allocation11 + $0x50] sm:$0xff] }
 0x159   :  { %v1146_v25 = vrot.slane %v1145_v40, 1  ;;  %v1156_v48 = vrot.slane %v1155_v50, 2  ;;  %v557_v14 = vmul.f32 %v2538_v1, %v2538_v1  ;;  %vm3064_vm8 = vcmask 1046534   ;;  %1389 = vmatpush.msra.mxu0 %v1363_v61 }
 0x15a   :  { %vm3063_vm9 = vcmask 1047559   ;;  %v1117_v49 = vmul.f32 %v1581_v6, %v1109_v62  ;;  %v2591_v54 = vadd.f32 %v544_v9, %v543_v38  ;;  %v2593_v56 = vadd.f32 %v1134_v44, %v1133_v5  ;;  %v1358_v62 = vld [vmem:[#allocation11 + $0x48] sm:$0xff] }
 0x15b   :  { %v1157_v13 = vadd.f32 %v1156_v48, %v1155_v50  ;;  %v1167_v59 = vmul.f32 %v2582_v58, %v2582_v58  ;;  %v559_v31 = vmul.f32 %v2584_v12, %v2584_v12  ;;  %v2599_v33 = vadd.f32 %v1140_v21, %v1139_v23 }
 0x15c   :  { %v1152_v8 = vrot.slane %v1151_v28, 1  ;;  %v1160_v27 = vrot.slane %v1117_v49, 4  ;;  %v558_v18 = vmul.f32 %v2591_v54, %v2591_v54  ;;  %v2603_v3 = vadd.f32 %v1146_v25, %v1145_v40  ;;  %v1362_v40 = vld [vmem:[#allocation11 + $0x68] sm:$0xff]  ;;  %v1356_v25 = vld [vmem:[#allocation11 + $0x38] sm:$0xff] }
 0x15d   :  { %v1158_v60 = vrot.slane %v1157_v13, 1  ;;  %v1166_v20 = vmul.f32 %v2587_v29, %v2587_v29  ;;  %v577_v7 = vsel %vm3065_vm5, %v557_v14, %v575_v63  ;;  %v1168_v34 = vmul.f32 %v2593_v56, %v2593_v56  ;;  %1390 = vmatpush.msra.mxu0 %v1362_v40  ;;  %v1360_v63 = vld [vmem:[#allocation11 + $0x58] sm:$0xff]  ;;  %v1355_v14 = vld [vmem:[#allocation11 + $0x30] sm:$0xff] }
 0x15e   :  { %v1161_v47 = vadd.f32 %v1160_v27, %v1117_v49  ;;  %v579_v15 = vsel %vm3064_vm8, %v558_v18, %v577_v7  ;;  %v2613_v53 = vadd.f32 %v1152_v8, %v1151_v28  ;;  %v1169_v4 = vmul.f32 %v2599_v33, %v2599_v33  ;;  %v1357_v28 = vld [vmem:[#allocation11 + $0x40] sm:$0xff] }
 0x15f   :  { %v1182_v11 = vsel %vm568_vm0, %v1167_v59, %v1166_v20  ;;  %v581_v42 = vsel %vm3063_vm9, %v559_v31, %v579_v15  ;;  %v2617_v43 = vadd.f32 %v1158_v60, %v1157_v13  ;;  %v1170_v24 = vmul.f32 %v2603_v3, %v2603_v3  ;;  %1391 = vmatpush.msra.mxu0 %v1361_v45  ;;  %v1354_v59 = vld [vmem:[#allocation11 + $0x28] sm:$0xff]  ;;  %v1353_v18 = vld [vmem:[#allocation11 + $0x20] sm:$0xff] }
 0x160   :  { %v1162_v35 = vrot.slane %v1161_v47, 2  ;;  %583 = vadd.xlane.f32.xlu1 %v581_v42  ;;  %v1183_v19 = vsel %vm570_vm1, %v1168_v34, %v1182_v11  ;;  %v1171_v26 = vmul.f32 %v2613_v53, %v2613_v53  ;;  %v1351_v34 = vld [vmem:[#allocation11 + $0x10] sm:$0xff] }
 0x161   :  { %v1184_v10 = vsel %vm3067_vm2, %v1169_v4, %v1183_v19  ;;  %v1172_v0 = vmul.f32 %v2617_v43, %v2617_v43  ;;  %1392 = vmatpush.msra.mxu0 %v1360_v63  ;;  %v1350_v4 = vld [vmem:[#allocation11 + $0x8] sm:$0xff] }
 0x162   :  { %v1163_v17 = vadd.f32 %v1162_v35, %v1161_v47  ;;  %v1185_v32 = vsel %vm3066_vm13, %v1170_v24, %v1184_v10  ;;  %v1352_v47 = vld [vmem:[#allocation11 + $0x18] sm:$0xff] }
 0x163   :  { %v1186_v30 = vsel %vm3065_vm5, %v1171_v26, %v1185_v32  ;;  %1393 = vmatpush.msra.mxu0 %v1359_v52 }
 0x164   :  { %v1164_v46 = vrot.slane %v1163_v17, 1  ;;  %v1187_v39 = vsel %vm3064_vm8, %v1172_v0, %v1186_v30 }
 0x165   :  { %1394 = vmatpush.msra.mxu0 %v1358_v62 }
 0x166   :  { %v2628_v57 = vadd.f32 %v1164_v46, %v1163_v17  ;;  %v1349_v17 = vld [vmem:[#allocation11] sm:$0xff] }
 0x167   :  { %1395 = vmatpush.msra.mxu0 %v1357_v28 }
 0x168   :  { %v1173_v5 = vmul.f32 %v2628_v57, %v2628_v57 }
 0x169   :  { %1396 = vmatpush.msra.mxu0 %v1356_v25 }
 0x16a   :  { %v1188_v23 = vsel %vm3063_vm9, %v1173_v5, %v1187_v39 }
 0x16b   :  { %1190 = vadd.xlane.f32.xlu2 %v1188_v23  ;;  %1397 = vmatpush.msra.mxu0 %v1355_v14 }
 0x16d   :  { %1398 = vmatpush.msra.mxu0 %v1354_v59 }
 0x16f   :  { %1399 = vmatpush.msra.mxu0 %v1353_v18 }
 0x171   :  { %1400 = vmatpush.msra.mxu0 %v1352_v47 }
 0x173   :  { %1401 = vmatpush.msra.mxu0 %v1351_v34 }
 0x175   :  { %1402 = vmatpush.msra.mxu0 %v1350_v4 }
 0x177   :  { %1403 = vmatpush.msra.mxu0 %v1349_v17 }
 0x1d3   :  { %v584_v36 = vpop.xlane.xlu1 %583 }
 0x1d4   :  { %1535 = vrsqrt.f32 %v584_v36  ;;  %vm592_vm10 = vcmp.eq.f32.partialorder %v584_v36, inf  ;;  %v595_v31 = vand.u32 2147483648, %v584_v36  ;;  %vm594_vm11 = vcmp.eq.f32.partialorder %v584_v36, 0.0 }
 0x1da   :  { %v1536_v2 = vpop.eup %1535 }
 0x1db   :  { %v586_v38 = vmul.f32 %v1536_v2, %v584_v36 }
 0x1dd   :  { %v587_v44 = vmul.f32 %v1536_v2, %v586_v38 }
 0x1de   :  { %v2635_v50 = vpop.xlane.xlu2 %1190 }
 0x1df   :  { %1537 = vrsqrt.f32 %v2635_v50  ;;  %v588_v21 = vmul.f32 0.5, %v587_v44  ;;  %vm1199_vm12 = vcmp.eq.f32.partialorder %v2635_v50, inf  ;;  %vm1201_vm14 = vcmp.eq.f32.partialorder %v2635_v50, 0.0 }
 0x1e0   :  { %v1202_v5 = vand.u32 2147483648, %v2635_v50 }
 0x1e1   :  { %v589_v9 = vsub.f32 1.5, %v588_v21 }
 0x1e3   :  { %v590_v48 = vmul.f32 %v1536_v2, %v589_v9 }
 0x1e5   :  { %v1538_v6 = vpop.eup %1537  ;;  %v591_v49 = vmul.f32 %v590_v48, %v584_v36 }
 0x1e6   :  { %v1193_v13 = vmul.f32 %v1538_v6, %v2635_v50 }
 0x1e7   :  { %v593_v8 = vsel %vm592_vm10, %v584_v36, %v591_v49 }
 0x1e8   :  { %v1194_v27 = vmul.f32 %v1538_v6, %v1193_v13  ;;  %v596_v60 = vsel %vm594_vm11, %v595_v31, %v593_v8 }
 0x1e9   :  { %v2639_v20 = vadd.f32 1e-08, %v596_v60 }
 0x1ea   :  { %v1195_v7 = vmul.f32 0.5, %v1194_v27 }
 0x1eb   :  { %v2642_v11 = vrot.slane %v2639_v20, 1  ;;  %v2645_v42 = vrot.slane %v2639_v20, 2  ;;  %v2648_v24 = vrot.slane %v2639_v20, 3  ;;  %1539 = vrcp.f32 %v2639_v20 }
 0x1ec   :  { %v1196_v15 = vsub.f32 1.5, %v1195_v7  ;;  %v2653_v19 = vrot.slane %v2639_v20, 4  ;;  %v2663_v10 = vrot.slane %v2639_v20, 5  ;;  %v625_v0 = vand.u32 2147483648, %v2639_v20 }
 0x1ed   :  { %1541 = vrcp.f32 %v2642_v11  ;;  %v2671_v30 = vrot.slane %v2639_v20, 6  ;;  %v2674_v39 = vrot.slane %v2639_v20, 7  ;;  %vm619_vm15 = vweird.f32 %v2639_v20 }
 0x1ee   :  { %v1197_v35 = vmul.f32 %v1538_v6, %v1196_v15  ;;  %1543 = vrcp.f32 %v2645_v42  ;;  %v623_v61 = vand.u32 2147483647, %v2639_v20  ;;  %v640_v45 = vand.u32 2147483648, %v2642_v11 }
 0x1ef   :  { %1545 = vrcp.f32 %v2648_v24  ;;  %vm634_vm3 = vweird.f32 %v2642_v11  ;;  %v638_v2 = vand.u32 2147483647, %v2642_v11  ;;  %v2692_v44 = vor.u32 1.1754944e-38, %v625_v0 }
 0x1f0   :  { %v1198_v46 = vmul.f32 %v1197_v35, %v2635_v50  ;;  %1547 = vrcp.f32 %v2653_v19  ;;  %v655_v21 = vand.u32 2147483648, %v2645_v42  ;;  %v653_v25 = vand.u32 2147483647, %v2645_v42 }
 0x1f1   :  { %v2659_v26 = vpop.eup %1539  ;;  %1549 = vrcp.f32 %v2663_v10  ;;  %v641_v13 = vor.u32 1.1754944e-38, %v640_v45  ;;  %vm649_vm4 = vweird.f32 %v2645_v42  ;;  %vm2713_vm7 = vcmp.eq.f32.partialorder %v623_v61, 8.507059e+37 }
 0x1f2   :  { %v615_v23 = vmul.f32 %v2659_v26, %v2639_v20  ;;  %v1200_v16 = vsel %vm1199_vm12, %v2635_v50, %v1198_v46  ;;  %v668_v50 = vand.u32 2147483647, %v2648_v24  ;;  %vm620_vm6 = vweird.f32 %v2659_v26 }
 0x1f3   :  { %v2667_v32 = vpop.eup %1541  ;;  %v1203_v28 = vsel %vm1201_vm14, %v1202_v5, %v1200_v16  ;;  %v656_v60 = vor.u32 1.1754944e-38, %v655_v21  ;;  %vm664_vm10 = vweird.f32 %v2648_v24  ;;  %vm2719_vm12 = vcmp.eq.f32.partialorder %v638_v2, 8.507059e+37  ;;  %vm2739_vm8 = vmor %vm619_vm15, %vm620_vm6 }
 0x1f4   :  { %v2678_v36 = vpop.eup %1543  ;;  %v630_v40 = vmul.f32 %v2667_v32, %v2642_v11  ;;  %v616_v63 = vsub.f32 1.0, %v615_v23  ;;  %v2710_v27 = vadd.f32 1e-08, %v1203_v28  ;;  %vm635_vm11 = vweird.f32 %v2667_v32 }
 0x1f5   :  { %v645_v38 = vmul.f32 %v2678_v36, %v2645_v42  ;;  %v2690_v52 = vpop.eup %1545  ;;  %vm2723_vm14 = vcmp.eq.f32.partialorder %v653_v25, 8.507059e+37  ;;  %v670_v34 = vand.u32 2147483648, %v2648_v24  ;;  %vm650_vm9 = vweird.f32 %v2678_v36  ;;  %vm2754_vm2 = vmor %vm634_vm3, %vm635_vm11 }
 0x1f6   :  { %v631_v62 = vsub.f32 1.0, %v630_v40  ;;  %v660_v48 = vmul.f32 %v2690_v52, %v2648_v24  ;;  %v2701_v14 = vpop.eup %1547  ;;  %v617_v6 = vmul.f32 %v2659_v26, %v616_v63  ;;  %1551 = vrcp.f32 %v2671_v30  ;;  %vm2765_vm15 = vmor %vm649_vm4, %vm650_vm9 }
 0x1f7   :  { %v646_v9 = vsub.f32 1.0, %v645_v38  ;;  %v675_v8 = vmul.f32 %v2701_v14, %v2653_v19  ;;  %v2729_v4 = vpop.eup %1549  ;;  %vm665_vm5 = vweird.f32 %v2690_v52  ;;  %vm2746_vm13 = vcmp.eq.f32.partialorder %v668_v50, 8.507059e+37 }
 0x1f8   :  { %v632_v49 = vmul.f32 %v2667_v32, %v631_v62  ;;  %v661_v31 = vsub.f32 1.0, %v660_v48  ;;  %v618_v17 = vadd.f32 %v2659_v26, %v617_v6  ;;  %v683_v40 = vand.u32 2147483647, %v2653_v19  ;;  %vm2780_vm9 = vmor %vm664_vm10, %vm665_vm5 }
 0x1f9   :  { %v647_v59 = vmul.f32 %v2678_v36, %v646_v9  ;;  %v676_v35 = vsub.f32 1.0, %v675_v8  ;;  %v685_v45 = vand.u32 2147483648, %v2653_v19  ;;  %v690_v63 = vmul.f32 %v2729_v4, %v2663_v10 }
 0x1fa   :  { %v662_v15 = vmul.f32 %v2690_v52, %v661_v31  ;;  %v633_v46 = vadd.f32 %v2667_v32, %v632_v49  ;;  %v671_v11 = vor.u32 1.1754944e-38, %v670_v34  ;;  %vm679_vm3 = vweird.f32 %v2653_v19 }
 0x1fb   :  { %v648_v5 = vadd.f32 %v2678_v36, %v647_v59  ;;  %v677_v61 = vmul.f32 %v2701_v14, %v676_v35  ;;  %v698_v38 = vand.u32 2147483647, %v2663_v10  ;;  %v700_v62 = vand.u32 2147483648, %v2663_v10 }
 0x1fc   :  { %v663_v23 = vadd.f32 %v2690_v52, %v662_v15  ;;  %v622_v21 = vsel %vm2739_vm8, %v2659_v26, %v618_v17  ;;  %v637_v28 = vsel %vm2754_vm2, %v2667_v32, %v633_v46  ;;  %vm680_vm4 = vweird.f32 %v2701_v14  ;;  %v2793_v24 = vpop.eup %1551 }
 0x1fd   :  { %v691_v9 = vsub.f32 1.0, %v690_v63  ;;  %v652_v25 = vsel %vm2765_vm15, %v2678_v36, %v648_v5  ;;  %v678_v48 = vadd.f32 %v2701_v14, %v677_v61  ;;  %1553 = vrcp.f32 %v2674_v39  ;;  %vm2820_vm6 = vmor %vm679_vm3, %vm680_vm4 }
 0x1fe   :  { %v667_v26 = vsel %vm2780_vm9, %v2690_v52, %v663_v23  ;;  %vm2795_vm2 = vcmp.eq.f32.partialorder %v683_v40, 8.507059e+37  ;;  %v686_v6 = vor.u32 1.1754944e-38, %v685_v45  ;;  %vm694_vm5 = vweird.f32 %v2663_v10 }
 0x1ff   :  { %v692_v49 = vmul.f32 %v2729_v4, %v691_v9  ;;  %v627_v36 = vsel %vm2713_vm7, %v2692_v44, %v622_v21  ;;  %vm2804_vm8 = vcmp.eq.f32.partialorder %v698_v38, 8.507059e+37  ;;  %v701_v59 = vor.u32 1.1754944e-38, %v700_v62 }
 0x200   :  { %v705_v31 = vmul.f32 %v2793_v24, %v2671_v30  ;;  %v642_v50 = vsel %vm2719_vm12, %v641_v13, %v637_v28  ;;  %v657_v8 = vsel %vm2723_vm14, %v656_v60, %v652_v25  ;;  %v672_v15 = vsel %vm2746_vm13, %v671_v11, %v667_v26 }
 0x201   :  { %vm695_vm7 = vweird.f32 %v2729_v4  ;;  %v682_v13 = vsel %vm2820_vm6, %v2701_v14, %v678_v48  ;;  %v693_v18 = vadd.f32 %v2729_v4, %v692_v49  ;;  %v2830_v7 = vrot.slane %v2710_v27, 1 }
 0x202   :  { %v706_v60 = vsub.f32 1.0, %v705_v31  ;;  %v2833_v47 = vmul.f32 %v627_v36, %v2455_v55  ;;  %vm709_vm13 = vweird.f32 %v2671_v30  ;;  %v713_v19 = vand.u32 2147483647, %v2671_v30  ;;  %vm696_vm10 = vmor %vm694_vm5, %vm695_vm7 }
 0x203   :  { %v715_v34 = vand.u32 2147483648, %v2671_v30  ;;  %v2838_v35 = vpop.eup %1553  ;;  %v2841_v17 = vmul.f32 %v642_v50, %v2464_v22  ;;  %v2845_v46 = vrot.slane %v2710_v27, 2  ;;  %1555 = vrcp.f32 %v2710_v27 }
 0x204   :  { %v707_v14 = vmul.f32 %v2793_v24, %v706_v60  ;;  %v2849_v55 = vmul.f32 %v657_v8, %v2458_v41  ;;  %v2852_v0 = vmul.f32 %v672_v15, %v2485_v37  ;;  %v687_v5 = vsel %vm2795_vm2, %v686_v6, %v682_v13 }
 0x205   :  { %v720_v22 = vmul.f32 %v2838_v35, %v2674_v39  ;;  %v697_v23 = vsel %vm696_vm10, %v2729_v4, %v693_v18  ;;  %vm710_vm11 = vweird.f32 %v2793_v24  ;;  %1557 = vrcp.f32 %v2830_v7 }
 0x206   :  { %v708_v16 = vadd.f32 %v2793_v24, %v707_v14  ;;  %vm2866_vm12 = vcmp.eq.f32.partialorder %v713_v19, 8.507059e+37  ;;  %v716_v37 = vor.u32 1.1754944e-38, %v715_v34  ;;  %v728_v20 = vand.u32 2147483647, %v2674_v39  ;;  %vm2884_vm14 = vmor %vm709_vm13, %vm710_vm11 }
 0x207   :  { %v2872_v10 = vrot.slane %v2710_v27, 3  ;;  %v2875_v61 = vmul.f32 %v687_v5, %v2511_v51  ;;  %v730_v4 = vand.u32 2147483648, %v2674_v39  ;;  %v1232_v40 = vand.u32 2147483648, %v2710_v27 }
 0x208   :  { %1559 = vrcp.f32 %v2845_v46  ;;  %v702_v45 = vsel %vm2804_vm8, %v701_v59, %v697_v23  ;;  %v721_v2 = vsub.f32 1.0, %v720_v22  ;;  %v2889_v11 = vrot.slane %v2710_v27, 4 }
 0x209   :  { %v2892_v51 = vrot.slane %v2710_v27, 5  ;;  %v2894_v38 = vpop.eup %1555  ;;  %v712_v62 = vsel %vm2884_vm14, %v2793_v24, %v708_v16  ;;  %v2900_v21 = vrot.slane %v2710_v27, 6  ;;  %v1245_v30 = vand.u32 2147483647, %v2830_v7 }
 0x20a   :  { %v1247_v28 = vand.u32 2147483648, %v2830_v7  ;;  %v2905_v42 = vrot.slane %v2710_v27, 7  ;;  %v1222_v9 = vmul.f32 %v2894_v38, %v2710_v27  ;;  %v1230_v25 = vand.u32 2147483647, %v2710_v27 }
 0x20b   :  { %1561 = vrcp.f32 %v2872_v10  ;;  %v1558_v26 = vpop.eup %1557  ;;  %v2912_v48 = vmul.f32 %v702_v45, %v2538_v1  ;;  %vm1226_vm15 = vweird.f32 %v2710_v27  ;;  %v1233_v24 = vor.u32 1.1754944e-38, %v1232_v40 }
 0x20c   :  { %vm1241_vm3 = vweird.f32 %v2830_v7  ;;  %v2918_v32 = vsel %vm2866_vm12, %v716_v37, %v712_v62  ;;  %v722_v6 = vmul.f32 %v2838_v35, %v721_v2  ;;  %v1223_v49 = vsub.f32 1.0, %v1222_v9 }
 0x20d   :  { %v1237_v36 = vmul.f32 %v1558_v26, %v2830_v7  ;;  %vm2922_vm9 = vcmp.eq.f32.partialorder %v1245_v30, 8.507059e+37  ;;  %v1248_v1 = vor.u32 1.1754944e-38, %v1247_v28  ;;  %v1260_v31 = vand.u32 2147483647, %v2845_v46 }
 0x20e   :  { %v1560_v52 = vpop.eup %1559  ;;  %1563 = vrcp.f32 %v2889_v11  ;;  %v1224_v50 = vmul.f32 %v2894_v38, %v1223_v49  ;;  %vm2929_vm4 = vcmp.eq.f32.partialorder %v1230_v25, 8.507059e+37  ;;  %v1262_v13 = vand.u32 2147483648, %v2845_v46 }
 0x20f   :  { %v1238_v15 = vsub.f32 1.0, %v1237_v36  ;;  %v1252_v44 = vmul.f32 %v1560_v52, %v2845_v46  ;;  %vm1227_vm2 = vweird.f32 %v2894_v38  ;;  %vm1256_vm5 = vweird.f32 %v2845_v46 }
 0x210   :  { %v1275_v18 = vand.u32 2147483647, %v2872_v10  ;;  %v1277_v60 = vand.u32 2147483648, %v2872_v10  ;;  %v1225_v34 = vadd.f32 %v2894_v38, %v1224_v50  ;;  %vm1242_vm8 = vweird.f32 %v1558_v26  ;;  %vm2951_vm7 = vmor %vm1226_vm15, %vm1227_vm2 }
 0x211   :  { %v1562_v19 = vpop.eup %1561  ;;  %v1239_v14 = vmul.f32 %v1558_v26, %v1238_v15  ;;  %v1253_v5 = vsub.f32 1.0, %v1252_v44  ;;  %v2941_v22 = vadd.f32 %v2838_v35, %v722_v6  ;;  %vm2943_vm6 = vcmp.eq.f32.partialorder %v1260_v31, 8.507059e+37  ;;  %vm1243_vm10 = vmor %vm1241_vm3, %vm1242_vm8 }
 0x212   :  { %v1267_v16 = vmul.f32 %v1562_v19, %v2872_v10  ;;  %1565 = vrcp.f32 %v2892_v51  ;;  %vm1257_vm13 = vweird.f32 %v1560_v52  ;;  %v1263_v45 = vor.u32 1.1754944e-38, %v1262_v13 }
 0x213   :  { %v1240_v37 = vadd.f32 %v1558_v26, %v1239_v14  ;;  %v1254_v40 = vmul.f32 %v1560_v52, %v1253_v5  ;;  %vm1271_vm11 = vweird.f32 %v2872_v10  ;;  %vm2958_vm12 = vcmp.eq.f32.partialorder %v1275_v18, 8.507059e+37  ;;  %vm1258_vm14 = vmor %vm1256_vm5, %vm1257_vm13 }
 0x214   :  { %v1564_v63 = vpop.eup %1563  ;;  %v1268_v2 = vsub.f32 1.0, %v1267_v16  ;;  %v1278_v27 = vor.u32 1.1754944e-38, %v1277_v60  ;;  %v1229_v30 = vsel %vm2951_vm7, %v2894_v38, %v1225_v34  ;;  %vm1272_vm15 = vweird.f32 %v1562_v19 }
 0x215   :  { %v1244_v28 = vsel %vm1243_vm10, %v1558_v26, %v1240_v37  ;;  %v1255_v9 = vadd.f32 %v1560_v52, %v1254_v40  ;;  %v1282_v25 = vmul.f32 %v1564_v63, %v2889_v11  ;;  %vm1286_vm3 = vweird.f32 %v2889_v11  ;;  %vm1273_vm5 = vmor %vm1271_vm11, %vm1272_vm15 }
 0x216   :  { %v1269_v7 = vmul.f32 %v1562_v19, %v1268_v2  ;;  %v1290_v6 = vand.u32 2147483647, %v2889_v11  ;;  %v1249_v49 = vsel %vm2922_vm9, %v1248_v1, %v1244_v28  ;;  %v1292_v38 = vand.u32 2147483648, %v2889_v11 }
 0x217   :  { %v1259_v36 = vsel %vm1258_vm14, %v1560_v52, %v1255_v9  ;;  %v1283_v31 = vsub.f32 1.0, %v1282_v25  ;;  %vm725_vm2 = vweird.f32 %v2838_v35  ;;  %v1234_v46 = vsel %vm2929_vm4, %v1233_v24, %v1229_v30 }
 0x218   :  { %v1566_v26 = vpop.eup %1565  ;;  %v1264_v50 = vsel %vm2943_vm6, %v1263_v45, %v1259_v36  ;;  %v1270_v15 = vadd.f32 %v1562_v19, %v1269_v7  ;;  %1567 = vrcp.f32 %v2900_v21  ;;  %vm1287_vm9 = vweird.f32 %v1564_v63 }
 0x219   :  { %v1284_v59 = vmul.f32 %v1564_v63, %v1283_v31  ;;  %v1297_v52 = vmul.f32 %v1566_v26, %v2892_v51  ;;  %v1305_v1 = vand.u32 2147483647, %v2892_v51  ;;  %vm724_vm8 = vweird.f32 %v2674_v39  ;;  %vm1288_vm4 = vmor %vm1286_vm3, %vm1287_vm9 }
 0x21a   :  { %v1250_v8 = vmul.f32 %v1249_v49, %v2582_v58  ;;  %v1265_v24 = vmul.f32 %v1264_v50, %v2593_v56  ;;  %v1274_v44 = vsel %vm1273_vm5, %v1562_v19, %v1270_v15  ;;  %v1307_v13 = vand.u32 2147483648, %v2892_v51  ;;  %vm3021_vm15 = vmor %vm724_vm8, %vm725_vm2 }
 0x21b   :  { %v1279_v18 = vsel %vm2958_vm12, %v1278_v27, %v1274_v44  ;;  %v1285_v10 = vadd.f32 %v1564_v63, %v1284_v59  ;;  %v1298_v60 = vsub.f32 1.0, %v1297_v52  ;;  %1569 = vrcp.f32 %v2905_v42 }
 0x21c   :  { %v1235_v34 = vmul.f32 %v1234_v46, %v2587_v29  ;;  %v1280_v14 = vmul.f32 %v1279_v18, %v2599_v33  ;;  %vm1291_vm6 = vcmp.eq.f32.partialorder %v1290_v6, 8.507059e+37  ;;  %v1293_v58 = vor.u32 1.1754944e-38, %v1292_v38 }
 0x21d   :  { %v1289_v56 = vsel %vm1288_vm4, %v1564_v63, %v1285_v10  ;;  %v1299_v19 = vmul.f32 %v1566_v26, %v1298_v60  ;;  %vm1301_vm7 = vweird.f32 %v2892_v51  ;;  %vm1302_vm13 = vweird.f32 %v1566_v26 }
 0x21e   :  { %v1568_v5 = vpop.eup %1567  ;;  %v1294_v23 = vsel %vm1291_vm6, %v1293_v58, %v1289_v56  ;;  %vm2995_vm10 = vcmp.eq.f32.partialorder %v1305_v1, 8.507059e+37  ;;  %v1342_v29 = vsub.f32 %v2841_v17, %v1250_v8  ;;  %v1343_v33 = vsub.f32 %v2849_v55, %v1265_v24  ;;  %vm1303_vm12 = vmor %vm1301_vm7, %vm1302_vm13  ;;  %v1408_v58 = vld [vmem:[#allocation8] sm:$0xff]  ;;  %v1409_v56 = vld [vmem:[#allocation9] sm:$0xff] }
 0x21f   :  { %v1295_v11 = vmul.f32 %v1294_v23, %v2603_v3  ;;  %v1300_v41 = vadd.f32 %v1566_v26, %v1299_v19  ;;  %v1308_v37 = vor.u32 1.1754944e-38, %v1307_v13  ;;  %v1312_v40 = vmul.f32 %v1568_v5, %v2900_v21 }
 0x220   :  { %vm3005_vm11 = vcmp.eq.f32.partialorder %v728_v20, 8.507059e+37  ;;  %v1320_v45 = vand.u32 2147483647, %v2900_v21  ;;  %v1341_v63 = vsub.f32 %v2833_v47, %v1235_v34  ;;  %v1344_v17 = vsub.f32 %v2852_v0, %v1280_v14 }
 0x221   :  { %v1373_v55 = vrot.slane %v1342_v29, 7  ;;  %v1570_v2 = vpop.eup %1569  ;;  %v1304_v3 = vsel %vm1303_vm12, %v1566_v26, %v1300_v41  ;;  %v1313_v62 = vsub.f32 1.0, %v1312_v40  ;;  %v1322_v27 = vand.u32 2147483648, %v2900_v21 }
 0x222   :  { %v1375_v30 = vrot.slane %v1343_v33, 6  ;;  %v1309_v20 = vsel %vm2995_vm10, %v1308_v37, %v1304_v3  ;;  %vm1317_vm14 = vweird.f32 %v1568_v5  ;;  %v1327_v28 = vmul.f32 %v1570_v2, %v2905_v42 }
 0x223   :  { %v1374_v9 = vsel %vm568_vm0, %v1373_v55, %v1341_v63  ;;  %v1310_v0 = vmul.f32 %v1309_v20, %v2613_v53  ;;  %v1314_v25 = vmul.f32 %v1568_v5, %v1313_v62  ;;  %v1345_v7 = vsub.f32 %v2875_v61, %v1295_v11 }
 0x224   :  { %v1376_v6 = vsel %vm570_vm1, %v1375_v30, %v1374_v9  ;;  %v727_v49 = vsel %vm3021_vm15, %v2838_v35, %v2941_v22  ;;  %vm1316_vm0 = vweird.f32 %v2900_v21  ;;  %v1328_v36 = vsub.f32 1.0, %v1327_v28 }
 0x225   :  { %v1377_v31 = vrot.slane %v1344_v17, 5  ;;  %v1315_v38 = vadd.f32 %v1568_v5, %v1314_v25  ;;  %v1323_v26 = vor.u32 1.1754944e-38, %v1322_v27  ;;  %v1335_v46 = vand.u32 2147483647, %v2905_v42  ;;  %vm1318_vm3 = vmor %vm1316_vm0, %vm1317_vm14 }
 0x226   :  { %v1337_v53 = vand.u32 2147483648, %v2905_v42  ;;  %v1329_v61 = vmul.f32 %v1570_v2, %v1328_v36  ;;  %vm1332_vm2 = vweird.f32 %v1570_v2  ;;  %v1346_v50 = vsub.f32 %v2912_v48, %v1310_v0 }
 0x227   :  { %vm3174_vm1 = vcmask 1043459   ;;  %v731_v35 = vor.u32 1.1754944e-38, %v730_v4  ;;  %v1319_v21 = vsel %vm1318_vm3, %v1568_v5, %v1315_v38  ;;  %vm1321_vm5 = vcmp.eq.f32.partialorder %v1320_v45, 8.507059e+37 }
 0x228   :  { %v1378_v15 = vsel %vm3174_vm1, %v1377_v31, %v1376_v6  ;;  %v1379_v22 = vrot.slane %v1345_v7, 4  ;;  %v718_v59 = vmul.f32 %v2918_v32, %v2591_v54  ;;  %v1324_v52 = vsel %vm1321_vm5, %v1323_v26, %v1319_v21 }
 0x229   :  { %v1330_v1 = vadd.f32 %v1570_v2, %v1329_v61  ;;  %vm1331_vm9 = vweird.f32 %v2905_v42  ;;  %v732_v8 = vsel %vm3005_vm11, %v731_v35, %v727_v49  ;;  %v1325_v48 = vmul.f32 %v1324_v52, %v2617_v43 }
 0x22a   :  { %vm1333_vm8 = vmor %vm1331_vm9, %vm1332_vm2  ;;  %v1338_v24 = vor.u32 1.1754944e-38, %v1337_v53  ;;  %vm3175_vm4 = vcmask 1044484   ;;  %vm1336_vm6 = vcmp.eq.f32.partialorder %v1335_v46, 8.507059e+37  ;;  %v1381_v44 = vrot.slane %v1346_v50, 3 }
 0x22b   :  { %v1380_v39 = vsel %vm3175_vm4, %v1379_v22, %v1378_v15  ;;  %v1334_v4 = vsel %vm1333_vm8, %v1570_v2, %v1330_v1  ;;  %v1347_v18 = vsub.f32 %v718_v59, %v1325_v48  ;;  %v733_v54 = vmul.f32 %v732_v8, %v2584_v12 }
 0x22c   :  { %v1339_v13 = vsel %vm1336_vm6, %v1338_v24, %v1334_v4  ;;  %vm3176_vm7 = vcmask 1045509   ;;  %vm3177_vm13 = vcmask 1046534   ;;  %vm3178_vm10 = vcmask 1047559  }
 0x22d   :  { %v1340_v32 = vmul.f32 %v1339_v13, %v2628_v57  ;;  %v1382_v42 = vsel %vm3176_vm7, %v1381_v44, %v1380_v39  ;;  %v1383_v10 = vrot.slane %v1347_v18, 2  ;;  %v1410_v19 = vmul.f32 0.4, %v1408_v58 }
 0x22e   :  { %v1411_v5 = vmul.f32 0.6, %v1409_v56  ;;  %v1416_v12 = vstv %s1429_s28  ;;  %vm1419_vm11 = vcmask 7168  }
 0x22f   :  { %v1348_v60 = vsub.f32 %v733_v54, %v1340_v32  ;;  %v1384_v34 = vsel %vm3177_vm13, %v1383_v10, %v1382_v42 }
 0x230   :  { %v1412_v23 = vadd.f32 %v1411_v5, %v1410_v19 }
 0x231   :  { %v1385_v43 = vrot.slane %v1348_v60, 1 }
 0x233   :  { %v1386_v14 = vsel %vm3178_vm10, %v1385_v43, %v1384_v34 }
 0x234   :  { %1404 = vmatmul.f32.vlgmr.msra.gmra.mxu0 %v1386_v14 }
 0x2b1   :  { %v1405_v16 = vpop.f32.mrf.mxu0 }
 0x2b2   :  { %v1413_v29 = vmul.f32 %v1412_v23, %v1405_v16 }
 0x2b4   :  { %1414 = vadd.xlane.f32.xlu0 %v1413_v29 }
 0x327   :  { %v1415_v57 = vpop.xlane.xlu0 %1414 }
 0x328   :  { %v1417_v33 = vadd.f32 %v1416_v12, %v1415_v57 }
 0x32a   :  { %v1418_v11 = vmax.f32 %v1417_v33, 0.0 }
 0x32c   :  { %1420 = vst.msk [vmem:[%s3062_s7] sm:$0xff] %vm1419_vm11, %v1418_v11 }
 0x32d   :  { %1425 = vsyncpa [#allocation3], 1 }
 0x32e   :  { %1426 = vsyncpa [#allocation7], 1 }
 0x32f   :  { %1427 = vsyncpa [#allocation10], 1 }
 0x330   :  { %1428 = vsyncpa [#allocation4], 1 }

</bundles_post_ra>
